<compile_context>
chip_gen: v6e
topology: v6e:2x2x1
jax: 0.10.0
libtpu: 0.0.40
codegen_flags: <defaults>
</compile_context>

<pallas_src>
import math

import jax
import jax.numpy as jnp
import jax.scipy.linalg as jsl
from jax.experimental import pallas as pl
from jax.experimental.pallas import tpu as pltpu


# ----------------------------- Pallas kernel ---------------------------------
def _forget_kernel(fv_ref, ct_ref, wcb_ref, wf_ref, wt_ref, b_ref, o_ref):
    # fv_ref: (tm, S*Np) bf16, ct_ref: (tm, S*E) bf16,
    # wcb_ref: (S*Np, S*E) bf16, wf_ref: (S*Np, E) bf16, wt_ref: (S*E, E) bf16,
    # b_ref: (1, E) f32, o_ref: (tm, E) f32.
    fv = fv_ref[...]

    # Batched bias-free cemb over every skill slot in ONE deep-K MXU pass
    # (K = S*Np = 1536, lane-aligned 256-wide result).
    cct = jnp.dot(fv, wcb_ref[...], preferred_element_type=jnp.float32)    # (tm, S*E)

    # forget_vector2 block of lstm_pre (separate lane-aligned dot -> no ragged
    # 288-wide intermediate, no in-kernel slices).
    fv_out = jnp.dot(fv, wf_ref[...], preferred_element_type=jnp.float32)  # (tm, E)

    # theta = concept_true * Cct (f32), then the theta block of lstm_pre on the MXU.
    theta = (ct_ref[...].astype(jnp.float32) * cct).astype(jnp.bfloat16)   # (tm, S*E)
    out = jnp.dot(theta, wt_ref[...], preferred_element_type=jnp.float32)  # (tm, E)

    o_ref[...] = (out + fv_out + b_ref[...]).astype(o_ref.dtype)


# ------------------------- one-time weight prepacking -------------------------
def prepack_forget_weights(w_cemb, w_pre, b_pre, num_skill, emb_dim, ntotal):
    """Hoisted out of the per-call path: build the bf16 prepacked weight tensors once.

    w_cemb: (E, N) torch Linear(ntotal, E, bias=False) weight
    w_pre : (E, S*(E+N)) torch Linear weight, b_pre: (E,)
    """
    S, E, N = num_skill, emb_dim, ntotal
    # Smallest Np >= N with (S*Np) % 128 == 0 -> fully dense lane tiles on the K axis.
    step = 128 // math.gcd(S, 128)
    Np = ((N + step - 1) // step) * step

    # cemb: W_cemb.T zero-padded on the feature axis, replicated block-diagonally so one
    # matmul applies it to every skill slot.
    wc = jnp.zeros((Np, E), jnp.float32).at[:N, :].set(w_cemb.T)      # (Np, E)
    wc_blk = jsl.block_diag(*([wc] * S))                              # (S*Np, S*E)

    # lstm_pre: rows of W_pre.T are grouped per skill as [E theta-rows, N fv-rows]
    # (matches the reference concat(theta, forget_vector2) ordering).
    wpre_t = w_pre.T.reshape(S, E + N, E)
    wt = wpre_t[:, :E, :].reshape(S * E, E)                           # (S*E, E) theta block
    wf = (jnp.zeros((S, Np, E), jnp.float32)
          .at[:, :N, :].set(wpre_t[:, E:, :])
          .reshape(S * Np, E))                                        # (S*Np, E) fv2 block

    return dict(
        wc_blk=wc_blk.astype(jnp.bfloat16),
        wf=wf.astype(jnp.bfloat16),
        wt=wt.astype(jnp.bfloat16),
        bias=b_pre.reshape(1, E).astype(jnp.float32),
        S=S, E=E, N=N, Np=Np,
    )


# ------------------------------ tiling policy ---------------------------------
def _round_up(x, m):
    return ((x + m - 1) // m) * m


def _choose_tm(M):
    """Row tile: large enough to amortize the ~0.35us/step overhead, small enough that the
    bf16 pipeline (~5.4 MiB at tm=512) stays well under every generation's scoped-VMEM
    default (v5e 16 MiB, v6e/v7x 32 MiB; v7x has only 64 MiB physical), and >= 2 grid steps
    whenever M allows so the 'parallel' axis can split across v7x's 2 TensorCores."""
    if M >= 1024:
        return 512
    if M >= 32:
        return _round_up((M + 1) // 2, 16)   # two-ish tiles, bf16-packed sublanes
    return 16                                 # one small tile (rows padded up to 16)


# ------------------------------- entry point -----------------------------------
def forget_integration_pallas(fv2, ctrue, packed):
    """fv2: (B,L,S,N) f32 one-hot forget features, ctrue: (B,L,S,E) f32,
       packed: output of prepack_forget_weights (built once, outside the hot path)."""
    B, L, S, N = fv2.shape
    E, Np = packed["E"], packed["Np"]
    assert S == packed["S"] and N == packed["N"]
    M = B * L
    SNp, SE = S * Np, S * E

    # Activations: zero-pad the per-skill feature dim to Np, flatten rows (pure row-major
    # views + pad, no transposes), cast to bf16 (fv2 is 0/1 one-hot -> cast is exact).
    fv_flat = jnp.pad(fv2, ((0, 0), (0, 0), (0, 0), (0, Np - N))
                      ).reshape(M, SNp).astype(jnp.bfloat16)
    ct_flat = ctrue.reshape(M, SE).astype(jnp.bfloat16)

    # Robust row tiling: pad M up to a tile multiple (padded rows produce bias-only
    # garbage that is sliced off), never a single giant tile.
    tm = _choose_tm(M)
    M_pad = _round_up(M, tm)
    if M_pad != M:
        fv_flat = jnp.pad(fv_flat, ((0, M_pad - M), (0, 0)))
        ct_flat = jnp.pad(ct_flat, ((0, M_pad - M), (0, 0)))
    grid = (M_pad // tm,)

    flops = 2 * M_pad * (SNp * SE + SNp * E + SE * E)
    bytes_accessed = (2 * M_pad * (SNp + SE)            # bf16 activation streams
                      + 4 * M_pad * E                    # f32 output
                      + 2 * (SNp * SE + SNp * E + SE * E) + 4 * E)   # weights

    out = pl.pallas_call(
        _forget_kernel,
        out_shape=jax.ShapeDtypeStruct((M_pad, E), jnp.float32),
        grid_spec=pltpu.PrefetchScalarGridSpec(
            num_scalar_prefetch=0,
            grid=grid,
            in_specs=[
                pl.BlockSpec((tm, SNp), lambda i: (i, 0)),   # forget_vector2 rows (bf16)
                pl.BlockSpec((tm, SE), lambda i: (i, 0)),    # concept_true rows (bf16)
                # Constant-index weights: <1 MiB resident in bf16, so default buffering is
                # harmless; they are DMA'd once and reused across all grid steps.
                pl.BlockSpec((SNp, SE), lambda i: (0, 0)),   # block-diag cemb
                pl.BlockSpec((SNp, E), lambda i: (0, 0)),    # lstm_pre fv2 block
                pl.BlockSpec((SE, E), lambda i: (0, 0)),     # lstm_pre theta block
                pl.BlockSpec((1, E), lambda i: (0, 0)),      # lstm_pre bias
            ],
            out_specs=pl.BlockSpec((tm, E), lambda i: (i, 0)),
        ),
        compiler_params=pltpu.CompilerParams(
            dimension_semantics=("parallel",)),
        cost_estimate=pl.CostEstimate(
            flops=int(flops), transcendentals=0, bytes_accessed=int(bytes_accessed)),
    )(fv_flat, ct_flat, packed["wc_blk"], packed["wf"], packed["wt"], packed["bias"])
    return out[:M].reshape(B, L, E)


# ------------------------------- JAX glue -------------------------------------
def build_forget_inputs(concepts, rgaps, pcounts, acounts,
                        rgap_eye, pcount_eye, acount_eye,
                        emb_table_skill, num_skill, forget_len):
    """Builds forget_vector2 (B,L,S,ntotal) and concept_true (B,L,S,E)."""
    B, L, C = concepts.shape
    # rgaps.unsqueeze(3).repeat(1,1,1,forget_len)
    rg = jnp.repeat(rgaps[..., None], forget_len, axis=3)            # (B,L,C,F)
    rg_oh = rgap_eye[rg].reshape(B, L, C, -1)
    pc_oh = pcount_eye[pcounts].reshape(B, L, C, -1)
    ac_oh = acount_eye[acounts].reshape(B, L, C, -1)
    fv1 = jnp.concatenate([rg_oh, pc_oh, ac_oh], axis=-1)            # (B,L,C,ntotal)

    N = fv1.shape[-1]
    E = emb_table_skill.shape[-1]
    fv2 = jnp.zeros((B, L, num_skill, N), jnp.float32)
    ctrue = jnp.zeros((B, L, num_skill, E), jnp.float32)

    # Vectorized equivalent of the reference's Python triple loop:
    # last-write-wins over feature_idx, skipping concept value -1.
    # TODO(synk): conceptIntegration submodule source is not provided; it is
    # synthesized here as skill-embedding lookup scattered into (B,L,S,E).
    for f in range(C):
        idx = concepts[:, :, f]                                      # (B,L)
        valid = (idx != -1)
        safe = jnp.where(valid, idx, 0)
        mask = (jax.nn.one_hot(safe, num_skill, dtype=jnp.float32)
                * valid[..., None].astype(jnp.float32))              # (B,L,S)
        fv2 = jnp.where(mask[..., None] > 0, fv1[:, :, f, None, :], fv2)
        emb = emb_table_skill[safe]                                  # (B,L,E)
        ctrue = jnp.where(mask[..., None] > 0, emb[:, :, None, :], ctrue)
    return fv2, ctrue


def reference_forward(fv2, ctrue, w_cemb, w_pre, b_pre):
    """Pure-JAX f32 reference of the fused part (for correctness check)."""
    cct = jnp.einsum('blsn,en->blse', fv2, w_cemb)
    theta = ctrue * cct
    theta = jnp.concatenate([theta, fv2], axis=-1)
    B, L = theta.shape[:2]
    theta = theta.reshape(B, L, -1)
    return theta @ w_pre.T + b_pre


# --------------------------------- main ---------------------------------------
if __name__ == "__main__":
    # Module hyper-parameters (small, consistent with the forward semantics)
    forget_window = (1.0 / 24, 1.0, 7.0)       # 3 windows -> forget_len = 4
    forget_len = len(forget_window) + 1
    num_rgap, num_pcount, num_acount = 10, 10, 12
    num_skill = 8
    emb_dim = 32
    ntotal = forget_len * (num_rgap + num_pcount + num_acount + 15)  # 4 * 47 = 188

    B, L, C = 2, 8, 4                           # batch, seq len, max_concept

    rgap_eye = jnp.eye(num_rgap + 5, dtype=jnp.float32)
    pcount_eye = jnp.eye(num_pcount + 5, dtype=jnp.float32)
    acount_eye = jnp.eye(num_acount + 5, dtype=jnp.float32)

    # Deterministic parameter init (synthetic; no checkpoint loading)
    key = jax.random.PRNGKey(0)
    k_emb, k_cemb, k_pre, k_b, k_c, k_r, k_p, k_a = jax.random.split(key, 8)
    emb_table_skill = 0.02 * jax.random.normal(k_emb, (num_skill, emb_dim), jnp.float32)
    w_cemb = 0.02 * jax.random.normal(k_cemb, (emb_dim, ntotal), jnp.float32)          # Linear(ntotal, E, bias=False)
    w_pre = 0.02 * jax.random.normal(k_pre, (emb_dim, num_skill * (emb_dim + ntotal)), jnp.float32)
    b_pre = 0.02 * jax.random.normal(k_b, (emb_dim,), jnp.float32)

    # One-time weight prepacking (hoisted out of the per-call hot path).
    packed = prepack_forget_weights(w_cemb, w_pre, b_pre, num_skill, emb_dim, ntotal)

    # Deterministic example inputs
    concepts = jax.random.randint(k_c, (B, L, C), -1, num_skill)                 # -1 = padding
    rgaps = jax.random.randint(k_r, (B, L, C), 0, num_rgap + 5)
    pcounts = jax.random.randint(k_p, (B, L, C, forget_len), 0, num_pcount + 5)
    acounts = jax.random.randint(k_a, (B, L, C, forget_len), 0, num_acount + 5)

    fv2, ctrue = build_forget_inputs(
        concepts, rgaps, pcounts, acounts,
        rgap_eye, pcount_eye, acount_eye,
        emb_table_skill, num_skill, forget_len)

    out = forget_integration_pallas(fv2, ctrue, packed)
    out = jax.block_until_ready(out)

    ref = reference_forward(fv2, ctrue, w_cemb, w_pre, b_pre)
    assert out.shape == (B, L, emb_dim)
    # bf16 matmul operands with f32 accumulation: loosen tolerance vs the f32 reference.
    assert jnp.allclose(out, ref, atol=1e-2, rtol=1e-2), "Pallas output mismatch vs reference"

    print("KERNEL_OK")
</pallas_src>

<mosaic_0001>
module attributes {stable_mosaic.version = 11 : i64} {
  func.func @_forget_kernel(%arg0: i32, %arg1: memref<16x1536xbf16, #tpu.memory_space<vmem>>, %arg2: memref<16x256xbf16, #tpu.memory_space<vmem>>, %arg3: memref<1536x256xbf16, #tpu.memory_space<vmem>>, %arg4: memref<1536x32xbf16, #tpu.memory_space<vmem>>, %arg5: memref<256x32xbf16, #tpu.memory_space<vmem>>, %arg6: memref<1x32xf32, #tpu.memory_space<vmem>>, %arg7: memref<16x32xf32, #tpu.memory_space<vmem>>) attributes {dimension_semantics = [#tpu.dimension_semantics<parallel>], iteration_bounds = array<i64: 1>, scalar_prefetch = 0 : i64, scratch_operands = 0 : i64, tpu.core_type = #tpu.core_type<tc>, window_params = [{transform_indices = @transform_0, window_bounds = array<i64: 16, 1536>}, {transform_indices = @transform_1, window_bounds = array<i64: 16, 256>}, {pipeline_mode = #tpu.pipeline_mode<synchronous>, transform_indices = @transform_2, window_bounds = array<i64: 1536, 256>}, {pipeline_mode = #tpu.pipeline_mode<synchronous>, transform_indices = @transform_3, window_bounds = array<i64: 1536, 32>}, {pipeline_mode = #tpu.pipeline_mode<synchronous>, transform_indices = @transform_4, window_bounds = array<i64: 256, 32>}, {pipeline_mode = #tpu.pipeline_mode<synchronous>, transform_indices = @transform_5, window_bounds = array<i64: 1, 32>}, {transform_indices = @transform_6, window_bounds = array<i64: 16, 32>}]} {
    %c0 = arith.constant 0 : index
    %c0_0 = arith.constant 0 : index
    %0 = vector.load %arg1[%c0, %c0_0] : memref<16x1536xbf16, #tpu.memory_space<vmem>>, vector<16x1536xbf16>
    %c0_1 = arith.constant 0 : index
    %c0_2 = arith.constant 0 : index
    %1 = vector.load %arg3[%c0_1, %c0_2] : memref<1536x256xbf16, #tpu.memory_space<vmem>>, vector<1536x256xbf16>
    %cst = arith.constant dense<0.000000e+00> : vector<16x256xf32>
    %2 = tpu.matmul %0, %1, %cst {dimension_numbers = #tpu.dot_dimension_numbers<[1], [0], [0], [1], [0, 0, 1, 1], [], []>} : vector<16x1536xbf16>, vector<1536x256xbf16>, vector<16x256xf32> -> vector<16x256xf32>
    %c0_3 = arith.constant 0 : index
    %c0_4 = arith.constant 0 : index
    %3 = vector.load %arg4[%c0_3, %c0_4] : memref<1536x32xbf16, #tpu.memory_space<vmem>>, vector<1536x32xbf16>
    %cst_5 = arith.constant dense<0.000000e+00> : vector<16x32xf32>
    %4 = tpu.matmul %0, %3, %cst_5 {dimension_numbers = #tpu.dot_dimension_numbers<[1], [0], [0], [1], [0, 0, 1, 1], [], []>} : vector<16x1536xbf16>, vector<1536x32xbf16>, vector<16x32xf32> -> vector<16x32xf32>
    %c0_6 = arith.constant 0 : index
    %c0_7 = arith.constant 0 : index
    %5 = vector.load %arg2[%c0_6, %c0_7] : memref<16x256xbf16, #tpu.memory_space<vmem>>, vector<16x256xbf16>
    %6 = arith.extf %5 : vector<16x256xbf16> to vector<16x256xf32>
    %7 = arith.mulf %6, %2 : vector<16x256xf32>
    %8 = arith.truncf %7 : vector<16x256xf32> to vector<16x256xbf16>
    %c0_8 = arith.constant 0 : index
    %c0_9 = arith.constant 0 : index
    %9 = vector.load %arg5[%c0_8, %c0_9] : memref<256x32xbf16, #tpu.memory_space<vmem>>, vector<256x32xbf16>
    %cst_10 = arith.constant dense<0.000000e+00> : vector<16x32xf32>
    %10 = tpu.matmul %8, %9, %cst_10 {dimension_numbers = #tpu.dot_dimension_numbers<[1], [0], [0], [1], [0, 0, 1, 1], [], []>} : vector<16x256xbf16>, vector<256x32xbf16>, vector<16x32xf32> -> vector<16x32xf32>
    %11 = arith.addf %10, %4 : vector<16x32xf32>
    %c0_11 = arith.constant 0 : index
    %c0_12 = arith.constant 0 : index
    %12 = vector.load %arg6[%c0_11, %c0_12] : memref<1x32xf32, #tpu.memory_space<vmem>>, vector<1x32xf32>
    %13 = vector.broadcast %12 : vector<1x32xf32> to vector<16x32xf32>
    %14 = arith.addf %11, %13 : vector<16x32xf32>
    %c0_13 = arith.constant 0 : index
    %c0_14 = arith.constant 0 : index
    %15 = vector.load %arg7[%c0_13, %c0_14] : memref<16x32xf32, #tpu.memory_space<vmem>>, vector<16x32xf32>
    tpu.vector_store %arg7[%c0_13, %c0_14], %14 {strides = array<i32>} : memref<16x32xf32, #tpu.memory_space<vmem>>, vector<16x32xf32>,
    return
  }
  func.func @transform_0(%arg0: i32) -> (i32, i32) {
    %c0_i32 = arith.constant 0 : i32
    %c0_i32_0 = arith.constant 0 : i32
    return %arg0, %c0_i32 : i32, i32
  }
  func.func @transform_1(%arg0: i32) -> (i32, i32) {
    %c0_i32 = arith.constant 0 : i32
    %c0_i32_0 = arith.constant 0 : i32
    return %arg0, %c0_i32 : i32, i32
  }
  func.func @transform_2(%arg0: i32) -> (i32, i32) {
    %c0_i32 = arith.constant 0 : i32
    %c0_i32_0 = arith.constant 0 : i32
    %c0_i32_1 = arith.constant 0 : i32
    return %c0_i32, %c0_i32_0 : i32, i32
  }
  func.func @transform_3(%arg0: i32) -> (i32, i32) {
    %c0_i32 = arith.constant 0 : i32
    %c0_i32_0 = arith.constant 0 : i32
    %c0_i32_1 = arith.constant 0 : i32
    return %c0_i32, %c0_i32_0 : i32, i32
  }
  func.func @transform_4(%arg0: i32) -> (i32, i32) {
    %c0_i32 = arith.constant 0 : i32
    %c0_i32_0 = arith.constant 0 : i32
    %c0_i32_1 = arith.constant 0 : i32
    return %c0_i32, %c0_i32_0 : i32, i32
  }
  func.func @transform_5(%arg0: i32) -> (i32, i32) {
    %c0_i32 = arith.constant 0 : i32
    %c0_i32_0 = arith.constant 0 : i32
    %c0_i32_1 = arith.constant 0 : i32
    return %c0_i32, %c0_i32_0 : i32, i32
  }
  func.func @transform_6(%arg0: i32) -> (i32, i32) {
    %c0_i32 = arith.constant 0 : i32
    %c0_i32_0 = arith.constant 0 : i32
    return %arg0, %c0_i32 : i32, i32
  }
}

</mosaic_0001>

<bundles_post_ra>
// kernel: tpu_custom_call.1
= control target key start
LH: loop header
LB: loop body
LE: loop exit
PB: predicated region body
PF: predicated region fallthrough
CT: control target
= control target key end

     0   :  { %11 = vsyncpa [#allocation3], 0  ;;  %s4162_s0 = inlined_call_operand.vmem [shape: bf16[16,1536], index: 0, kind: input, shape index: {}]   ;;  %s4163_s1 = inlined_call_operand.vmem [shape: bf16[16,256], index: 1, kind: input, shape index: {}]   ;;  %s4164_s2 = inlined_call_operand.hbm [shape: bf16[1536,256], index: 2, kind: input, shape index: {}]   ;;  %s4165_s3 = inlined_call_operand.vmem [shape: bf16[1536,32], index: 3, kind: input, shape index: {}]   ;;  %s4166_s4 = inlined_call_operand.vmem [shape: bf16[256,32], index: 4, kind: input, shape index: {}]   ;;  %s4167_s5 = inlined_call_operand.vmem [shape: f32[1,32], index: 5, kind: input, shape index: {}]   ;;  %s4168_s6 = inlined_call_operand.hbm [shape: f32[16,32], index: 6, kind: output, shape index: {}]  }
   0x1   :  { %12 = vsyncpa [#allocation4], 0  ;;  %s3690_s21 = smov [#allocation2]  }
   0x2   :  { %s22_s22 = sshll.u32 %s3690_s21, 4  ;;  %s23_s22 = int_to_ptr.vmem [resolvable:$true] %s22_s22 }
   0x3   :  { %s3654_s23 = scalar_lea.vmem %s23_s22, 24576  ;;  %p3659_p1 = scmp.lt.s32.totalorder %s23_s22, %s23_s22 }
   0x4   :  { %p3655_p0 = scmp.ne.s32.totalorder %s23_s22, %s3654_s23  ;;  %p3660_p2 = scmp.lt.s32.totalorder %s3654_s23, %s3654_s23 }
   0x6   :  { %p3661_p3 = por %p3660_p2, %p3659_p1 }
   0x8   :  { %p3662_p4 = pnand %p3661_p3, %p3655_p0 }
   0xa   :  { %3665 = shalt.err (!%p3662_p4)
}
   0xb   :  { %s3691_s24 = smov 128   ;;  %s3692_s25 = smov 8  }
   0xc   :  { %28 = dma.hbm_to_vmem [thread:$0]  %s4164_s2, 24576, %s23_s22, [#allocation3], %s3691_s24, %s3691_s24, %s3692_s25  }
   0xd   :  { %3686 = dma.done.wait [#allocation3], 24576  }
   0xe   :  { %3687 = vsyncadd [#allocation3], 4294942720  ;;  %v3220_v0 = vld [vmem:[#allocation2 + $0x74] ss:$8 sps:$4 sm:$0xff]   ;;  %v3224_v2 = vld [vmem:[#allocation2 + $0x70] ss:$8 sps:$4 sm:$0xff]  }
   0xf   :  { %v3222_v1 = vld [vmem:[#allocation2 + $0x174] ss:$8 sps:$4 sm:$0xff]   ;;  %1263 = vmatprep.subr.bf16.mxu0 %v3220_v0  ;;  %v3225_v3 = vld [vmem:[#allocation2 + $0x170] ss:$8 sps:$4 sm:$0xff]   ;;  %v3226_v4 = vld [vmem:[#allocation2 + $0x64] ss:$8 sps:$4 sm:$0xff]  }
  0x10   :  { %1306 = vmatprep.subr.bf16.mxu1 %v3222_v1  ;;  %1264 = vmatpush1.bf16.msra.mxu0 %v3224_v2  ;;  %v3228_v5 = vld [vmem:[#allocation2 + $0x164] ss:$8 sps:$4 sm:$0xff]   ;;  %v3230_v6 = vld [vmem:[#allocation2 + $0x60] ss:$8 sps:$4 sm:$0xff]   ;;  %v3232_v8 = vld [vmem:[#allocation2 + $0x54] ss:$8 sps:$4 sm:$0xff]  }
  0x11   :  { %1307 = vmatpush1.bf16.msra.mxu1 %v3225_v3  ;;  %1265 = vmatprep.subr.bf16.mxu0 %v3226_v4  ;;  %v3231_v7 = vld [vmem:[#allocation2 + $0x160] ss:$8 sps:$4 sm:$0xff]   ;;  %v3234_v9 = vld [vmem:[#allocation2 + $0x154] ss:$8 sps:$4 sm:$0xff]   ;;  %v3236_v10 = vld [vmem:[#allocation2 + $0x50] ss:$8 sps:$4 sm:$0xff]  }
  0x12   :  { %1308 = vmatprep.subr.bf16.mxu1 %v3228_v5  ;;  %v3237_v11 = vld [vmem:[#allocation2 + $0x150] ss:$8 sps:$4 sm:$0xff]   ;;  %v3238_v12 = vld [vmem:[#allocation2 + $0x44] ss:$8 sps:$4 sm:$0xff]   ;;  %v3242_v14 = vld [vmem:[#allocation2 + $0x40] ss:$8 sps:$4 sm:$0xff]  }
  0x13   :  { %v3240_v13 = vld [vmem:[#allocation2 + $0x144] ss:$8 sps:$4 sm:$0xff]   ;;  %v3243_v15 = vld [vmem:[#allocation2 + $0x140] ss:$8 sps:$4 sm:$0xff]   ;;  %v3244_v16 = vld [vmem:[#allocation2 + $0x34] ss:$8 sps:$4 sm:$0xff]  }
  0x14   :  { %1266 = vmatpush1.bf16.msra.mxu0 %v3230_v6  ;;  %v3246_v17 = vld [vmem:[#allocation2 + $0x134] ss:$8 sps:$4 sm:$0xff]   ;;  %v3248_v18 = vld [vmem:[#allocation2 + $0x30] ss:$8 sps:$4 sm:$0xff]   ;;  %v3250_v20 = vld [vmem:[#allocation2 + $0x24] ss:$8 sps:$4 sm:$0xff]  }
  0x15   :  { %1309 = vmatpush1.bf16.msra.mxu1 %v3231_v7  ;;  %1267 = vmatprep.subr.bf16.mxu0 %v3232_v8  ;;  %v3249_v19 = vld [vmem:[#allocation2 + $0x130] ss:$8 sps:$4 sm:$0xff]   ;;  %v3252_v21 = vld [vmem:[#allocation2 + $0x124] ss:$8 sps:$4 sm:$0xff]   ;;  %v3254_v22 = vld [vmem:[#allocation2 + $0x20] ss:$8 sps:$4 sm:$0xff]  }
  0x16   :  { %1310 = vmatprep.subr.bf16.mxu1 %v3234_v9  ;;  %v3255_v23 = vld [vmem:[#allocation2 + $0x120] ss:$8 sps:$4 sm:$0xff]   ;;  %v3256_v24 = vld [vmem:[#allocation2 + $0x14] ss:$8 sps:$4 sm:$0xff]   ;;  %v3260_v26 = vld [vmem:[#allocation2 + $0x10] ss:$8 sps:$4 sm:$0xff]  }
  0x17   :  { %v3258_v25 = vld [vmem:[#allocation2 + $0x114] ss:$8 sps:$4 sm:$0xff]   ;;  %v3261_v27 = vld [vmem:[#allocation2 + $0x110] ss:$8 sps:$4 sm:$0xff]   ;;  %v3262_v28 = vld [vmem:[#allocation2 + $0x4] ss:$8 sps:$4 sm:$0xff]  }
  0x18   :  { %1268 = vmatpush1.bf16.msra.mxu0 %v3236_v10  ;;  %v3264_v29 = vld [vmem:[#allocation2 + $0x104] ss:$8 sps:$4 sm:$0xff]   ;;  %v3266_v30 = vld [vmem:[#allocation2] ss:$8 sps:$4 sm:$0xff]   ;;  %v3268_v32 = vld [vmem:[#allocation2 + $0xf4] ss:$8 sps:$4 sm:$0xff]  }
  0x19   :  { %1311 = vmatpush1.bf16.msra.mxu1 %v3237_v11  ;;  %1269 = vmatprep.subr.bf16.mxu0 %v3238_v12  ;;  %v3267_v31 = vld [vmem:[#allocation2 + $0x100] ss:$8 sps:$4 sm:$0xff]   ;;  %v3270_v33 = vld [vmem:[#allocation2 + $0x1f4] ss:$8 sps:$4 sm:$0xff]   ;;  %v3272_v34 = vld [vmem:[#allocation2 + $0xf0] ss:$8 sps:$4 sm:$0xff]  }
  0x1a   :  { %1312 = vmatprep.subr.bf16.mxu1 %v3240_v13  ;;  %v3273_v35 = vld [vmem:[#allocation2 + $0x1f0] ss:$8 sps:$4 sm:$0xff]   ;;  %v3274_v36 = vld [vmem:[#allocation2 + $0xe4] ss:$8 sps:$4 sm:$0xff]   ;;  %v3278_v38 = vld [vmem:[#allocation2 + $0xe0] ss:$8 sps:$4 sm:$0xff]  }
  0x1b   :  { %v3276_v37 = vld [vmem:[#allocation2 + $0x1e4] ss:$8 sps:$4 sm:$0xff]   ;;  %v3279_v39 = vld [vmem:[#allocation2 + $0x1e0] ss:$8 sps:$4 sm:$0xff]   ;;  %v3280_v40 = vld [vmem:[#allocation2 + $0xd4] ss:$8 sps:$4 sm:$0xff]  }
  0x1c   :  { %1270 = vmatpush1.bf16.msra.mxu0 %v3242_v14  ;;  %v3282_v41 = vld [vmem:[#allocation2 + $0x1d4] ss:$8 sps:$4 sm:$0xff]   ;;  %v3284_v42 = vld [vmem:[#allocation2 + $0xd0] ss:$8 sps:$4 sm:$0xff]   ;;  %v3286_v44 = vld [vmem:[#allocation2 + $0xc4] ss:$8 sps:$4 sm:$0xff]  }
  0x1d   :  { %1313 = vmatpush1.bf16.msra.mxu1 %v3243_v15  ;;  %1271 = vmatprep.subr.bf16.mxu0 %v3244_v16  ;;  %v3285_v43 = vld [vmem:[#allocation2 + $0x1d0] ss:$8 sps:$4 sm:$0xff]   ;;  %v3288_v45 = vld [vmem:[#allocation2 + $0x1c4] ss:$8 sps:$4 sm:$0xff]   ;;  %v3290_v46 = vld [vmem:[#allocation2 + $0xc0] ss:$8 sps:$4 sm:$0xff]  }
  0x1e   :  { %1314 = vmatprep.subr.bf16.mxu1 %v3246_v17  ;;  %v3291_v47 = vld [vmem:[#allocation2 + $0x1c0] ss:$8 sps:$4 sm:$0xff]   ;;  %v3292_v48 = vld [vmem:[#allocation2 + $0xb4] ss:$8 sps:$4 sm:$0xff]   ;;  %v3296_v52 = vld [vmem:[#allocation2 + $0xb0] ss:$8 sps:$4 sm:$0xff]  }
  0x1f   :  { %v3318_v49 = vld [vmem:[%s4162_s0 + $0x4] ss:$48 sps:$4 sm:$0xff]   ;;  %v3321_v51 = vld [vmem:[%s4162_s0 + $0xc] ss:$48 sps:$4 sm:$0xff]   ;;  %v3297_v53 = vld [vmem:[#allocation2 + $0x1b0] ss:$8 sps:$4 sm:$0xff]  }
  0x20   :  { %1272 = vmatpush1.bf16.msra.mxu0 %v3248_v18  ;;  %v3294_v50 = vld [vmem:[#allocation2 + $0x1b4] ss:$8 sps:$4 sm:$0xff]   ;;  %1295 = vmatprep.mubr.bf16.mxu0 %v3318_v49  ;;  %v3298_v54 = vld [vmem:[#allocation2 + $0xa4] ss:$8 sps:$4 sm:$0xff]   ;;  %v3302_v56 = vld [vmem:[#allocation2 + $0xa0] ss:$8 sps:$4 sm:$0xff]  }
  0x21   :  { %1315 = vmatpush1.bf16.msra.mxu1 %v3249_v19  ;;  %1273 = vmatprep.subr.bf16.mxu0 %v3250_v20  ;;  %v3300_v55 = vld [vmem:[#allocation2 + $0x1a4] ss:$8 sps:$4 sm:$0xff]   ;;  %v3303_v57 = vld [vmem:[#allocation2 + $0x1a0] ss:$8 sps:$4 sm:$0xff]   ;;  %v3304_v58 = vld [vmem:[#allocation2 + $0x94] ss:$8 sps:$4 sm:$0xff]  }
  0x22   :  { %1316 = vmatprep.subr.bf16.mxu1 %v3252_v21  ;;  %1338 = vmatprep.mubr.bf16.mxu1 %v3321_v51  ;;  %v3306_v59 = vld [vmem:[#allocation2 + $0x194] ss:$8 sps:$4 sm:$0xff]   ;;  %v3308_v60 = vld [vmem:[#allocation2 + $0x90] ss:$8 sps:$4 sm:$0xff]   ;;  %v3310_v62 = vld [vmem:[#allocation2 + $0x84] ss:$8 sps:$4 sm:$0xff]  }
  0x23   :  { %v3309_v61 = vld [vmem:[#allocation2 + $0x190] ss:$8 sps:$4 sm:$0xff]   ;;  %v3312_v63 = vld [vmem:[#allocation2 + $0x184] ss:$8 sps:$4 sm:$0xff]   ;;  %v3314_v0 = vld [vmem:[#allocation2 + $0x80] ss:$8 sps:$4 sm:$0xff]  }
  0x24   :  { %1274 = vmatpush1.bf16.msra.mxu0 %v3254_v22  ;;  %v3315_v1 = vld [vmem:[#allocation2 + $0x180] ss:$8 sps:$4 sm:$0xff]   ;;  %v3324_v2 = vld [vmem:[#allocation2 + $0x274] ss:$8 sps:$4 sm:$0xff]   ;;  %v3322_v6 = vld [vmem:[#allocation2 + $0x270] ss:$8 sps:$4 sm:$0xff]  }
  0x25   :  { %1317 = vmatpush1.bf16.msra.mxu1 %v3255_v23  ;;  %1275 = vmatprep.subr.bf16.mxu0 %v3256_v24  ;;  %v3327_v3 = vld [vmem:[#allocation2 + $0x374] ss:$8 sps:$4 sm:$0xff]   ;;  %v3316_v4 = vld [vmem:[%s4162_s0] ss:$48 sps:$4 sm:$0xff]   ;;  %v3319_v5 = vld [vmem:[%s4162_s0 + $0x8] ss:$48 sps:$4 sm:$0xff]  }
  0x26   :  { %1318 = vmatprep.subr.bf16.mxu1 %v3258_v25  ;;  %v3325_v7 = vld [vmem:[#allocation2 + $0x370] ss:$8 sps:$4 sm:$0xff]   ;;  %v3330_v8 = vld [vmem:[#allocation2 + $0x264] ss:$8 sps:$4 sm:$0xff]   ;;  %v3328_v10 = vld [vmem:[#allocation2 + $0x260] ss:$8 sps:$4 sm:$0xff]  }
  0x27   :  { %v3333_v9 = vld [vmem:[#allocation2 + $0x364] ss:$8 sps:$4 sm:$0xff]   ;;  %v3331_v11 = vld [vmem:[#allocation2 + $0x360] ss:$8 sps:$4 sm:$0xff]   ;;  %v3336_v12 = vld [vmem:[#allocation2 + $0x254] ss:$8 sps:$4 sm:$0xff]  }
  0x28   :  { %1276 = vmatpush1.bf16.msra.mxu0 %v3260_v26  ;;  %v3339_v13 = vld [vmem:[#allocation2 + $0x354] ss:$8 sps:$4 sm:$0xff]   ;;  %v3334_v14 = vld [vmem:[#allocation2 + $0x250] ss:$8 sps:$4 sm:$0xff]   ;;  %v3342_v16 = vld [vmem:[#allocation2 + $0x244] ss:$8 sps:$4 sm:$0xff]  }
  0x29   :  { %1319 = vmatpush1.bf16.msra.mxu1 %v3261_v27  ;;  %1277 = vmatprep.subr.bf16.mxu0 %v3262_v28  ;;  %v3337_v15 = vld [vmem:[#allocation2 + $0x350] ss:$8 sps:$4 sm:$0xff]   ;;  %v3345_v17 = vld [vmem:[#allocation2 + $0x344] ss:$8 sps:$4 sm:$0xff]   ;;  %v3340_v18 = vld [vmem:[#allocation2 + $0x240] ss:$8 sps:$4 sm:$0xff]  }
  0x2a   :  { %1320 = vmatprep.subr.bf16.mxu1 %v3264_v29  ;;  %v3343_v19 = vld [vmem:[#allocation2 + $0x340] ss:$8 sps:$4 sm:$0xff]   ;;  %v3348_v20 = vld [vmem:[#allocation2 + $0x234] ss:$8 sps:$4 sm:$0xff]   ;;  %v3346_v22 = vld [vmem:[#allocation2 + $0x230] ss:$8 sps:$4 sm:$0xff]  }
  0x2b   :  { %v3351_v21 = vld [vmem:[#allocation2 + $0x334] ss:$8 sps:$4 sm:$0xff]   ;;  %v3349_v23 = vld [vmem:[#allocation2 + $0x330] ss:$8 sps:$4 sm:$0xff]   ;;  %v3354_v24 = vld [vmem:[#allocation2 + $0x224] ss:$8 sps:$4 sm:$0xff]  }
  0x2c   :  { %1278 = vmatpush1.bf16.msra.mxu0 %v3266_v30  ;;  %v3357_v25 = vld [vmem:[#allocation2 + $0x324] ss:$8 sps:$4 sm:$0xff]   ;;  %v3352_v26 = vld [vmem:[#allocation2 + $0x220] ss:$8 sps:$4 sm:$0xff]   ;;  %v3360_v28 = vld [vmem:[#allocation2 + $0x214] ss:$8 sps:$4 sm:$0xff]  }
  0x2d   :  { %1321 = vmatpush1.bf16.msra.mxu1 %v3267_v31  ;;  %1279 = vmatprep.subr.bf16.mxu0 %v3268_v32  ;;  %v3355_v27 = vld [vmem:[#allocation2 + $0x320] ss:$8 sps:$4 sm:$0xff]   ;;  %v3363_v29 = vld [vmem:[#allocation2 + $0x314] ss:$8 sps:$4 sm:$0xff]   ;;  %v3358_v30 = vld [vmem:[#allocation2 + $0x210] ss:$8 sps:$4 sm:$0xff]  }
  0x2e   :  { %1322 = vmatprep.subr.bf16.mxu1 %v3270_v33  ;;  %v3361_v31 = vld [vmem:[#allocation2 + $0x310] ss:$8 sps:$4 sm:$0xff]   ;;  %v3366_v32 = vld [vmem:[#allocation2 + $0x204] ss:$8 sps:$4 sm:$0xff]   ;;  %vm2725_vm0 = vcmask 261120   ;;  %s3693_s12 = smov [#allocation5]  }
  0x2f   :  { %v3369_v33 = vld [vmem:[#allocation2 + $0x304] ss:$8 sps:$4 sm:$0xff]   ;;  %v3385_v49 = vld [vmem:[#allocation2 + $0x3d0] ss:$8 sps:$4 sm:$0xff]   ;;  %s2733_s13 = sshll.u32 %s3693_s12, 4  ;;  %s2734_s13 = int_to_ptr.vmem [resolvable:$true] %s2733_s13 }
  0x30   :  { %1280 = vmatpush2.bf16.msra.mxu0 %v3272_v34  ;;  %v3420_v34 = vld [vmem:[%s4162_s0 + $0x14] ss:$48 sps:$4 sm:$0xff]   ;;  %s3666_s14 = scalar_lea.vmem %s2734_s13, 256  ;;  %p3671_p6 = scmp.lt.s32.totalorder %s2734_s13, %s2734_s13 }
  0x31   :  { %1323 = vmatpush2.bf16.msra.mxu1 %v3273_v35  ;;  %1281 = vmatprep.subr.bf16.mxu0 %v3274_v36  ;;  %v3423_v35 = vld [vmem:[%s4162_s0 + $0x1c] ss:$48 sps:$4 sm:$0xff]   ;;  %v3364_v36 = vld [vmem:[#allocation2 + $0x200] ss:$8 sps:$4 sm:$0xff]   ;;  %p3667_p5 = scmp.ne.s32.totalorder %s2734_s13, %s3666_s14  ;;  %p3672_p7 = scmp.lt.s32.totalorder %s3666_s14, %s3666_s14 }
  0x32   :  { %1324 = vmatprep.subr.bf16.mxu1 %v3276_v37  ;;  %v3367_v37 = vld [vmem:[#allocation2 + $0x300] ss:$8 sps:$4 sm:$0xff]   ;;  %v3393_v51 = vld [vmem:[#allocation2 + $0x3c4] ss:$8 sps:$4 sm:$0xff]  }
  0x33   :  { %p3673_p8 = por %p3672_p7, %p3671_p6 }
  0x34   :  { %1282 = vmatpush2.bf16.msra.mxu0 %v3278_v38  ;;  %v3372_v38 = vld [vmem:[#allocation2 + $0x2f4] ss:$8 sps:$4 sm:$0xff]  }
  0x35   :  { %1325 = vmatpush2.bf16.msra.mxu1 %v3279_v39  ;;  %1283 = vmatprep.subr.bf16.mxu0 %v3280_v40  ;;  %v3375_v39 = vld [vmem:[#allocation2 + $0x3f4] ss:$8 sps:$4 sm:$0xff]   ;;  %v3370_v40 = vld [vmem:[#allocation2 + $0x2f0] ss:$8 sps:$4 sm:$0xff]   ;;  %p3674_p9 = pnand %p3673_p8, %p3667_p5 }
  0x36   :  { %1326 = vmatprep.subr.bf16.mxu1 %v3282_v41  ;;  %v3373_v41 = vld [vmem:[#allocation2 + $0x3f0] ss:$8 sps:$4 sm:$0xff]  }
  0x38   :  { %1284 = vmatpush2.bf16.msra.mxu0 %v3284_v42  ;;  %v3378_v42 = vld [vmem:[#allocation2 + $0x2e4] ss:$8 sps:$4 sm:$0xff]  }
  0x39   :  { %1327 = vmatpush2.bf16.msra.mxu1 %v3285_v43  ;;  %1285 = vmatprep.subr.bf16.mxu0 %v3286_v44  ;;  %v3381_v43 = vld [vmem:[#allocation2 + $0x3e4] ss:$8 sps:$4 sm:$0xff]   ;;  %v3376_v44 = vld [vmem:[#allocation2 + $0x2e0] ss:$8 sps:$4 sm:$0xff]  }
  0x3a   :  { %1328 = vmatprep.subr.bf16.mxu1 %v3288_v45  ;;  %v3379_v45 = vld [vmem:[#allocation2 + $0x3e0] ss:$8 sps:$4 sm:$0xff]  }
  0x3c   :  { %1286 = vmatpush2.bf16.msra.mxu0 %v3290_v46  ;;  %v3384_v46 = vld [vmem:[#allocation2 + $0x2d4] ss:$8 sps:$4 sm:$0xff]  }
  0x3d   :  { %1329 = vmatpush2.bf16.msra.mxu1 %v3291_v47  ;;  %1287 = vmatprep.subr.bf16.mxu0 %v3292_v48  ;;  %v3387_v47 = vld [vmem:[#allocation2 + $0x3d4] ss:$8 sps:$4 sm:$0xff]   ;;  %v3382_v48 = vld [vmem:[#allocation2 + $0x2d0] ss:$8 sps:$4 sm:$0xff]  }
  0x3e   :  { %1330 = vmatprep.subr.bf16.mxu1 %v3294_v50  ;;  %v3390_v50 = vld [vmem:[#allocation2 + $0x2c4] ss:$8 sps:$4 sm:$0xff]  }
  0x40   :  { %1288 = vmatpush2.bf16.msra.mxu0 %v3296_v52  ;;  %v3388_v52 = vld [vmem:[#allocation2 + $0x2c0] ss:$8 sps:$4 sm:$0xff]  }
  0x41   :  { %1331 = vmatpush2.bf16.msra.mxu1 %v3297_v53  ;;  %1289 = vmatprep.subr.bf16.mxu0 %v3298_v54  ;;  %v3391_v53 = vld [vmem:[#allocation2 + $0x3c0] ss:$8 sps:$4 sm:$0xff]   ;;  %v3396_v54 = vld [vmem:[#allocation2 + $0x2b4] ss:$8 sps:$4 sm:$0xff]  }
  0x42   :  { %1332 = vmatprep.subr.bf16.mxu1 %v3300_v55  ;;  %v3399_v55 = vld [vmem:[#allocation2 + $0x3b4] ss:$8 sps:$4 sm:$0xff]  }
  0x44   :  { %1290 = vmatpush2.bf16.msra.mxu0 %v3302_v56  ;;  %v3394_v56 = vld [vmem:[#allocation2 + $0x2b0] ss:$8 sps:$4 sm:$0xff]  }
  0x45   :  { %1333 = vmatpush2.bf16.msra.mxu1 %v3303_v57  ;;  %1291 = vmatprep.subr.bf16.mxu0 %v3304_v58  ;;  %v3397_v57 = vld [vmem:[#allocation2 + $0x3b0] ss:$8 sps:$4 sm:$0xff]   ;;  %v3402_v58 = vld [vmem:[#allocation2 + $0x2a4] ss:$8 sps:$4 sm:$0xff]  }
  0x46   :  { %1334 = vmatprep.subr.bf16.mxu1 %v3306_v59  ;;  %v3405_v59 = vld [vmem:[#allocation2 + $0x3a4] ss:$8 sps:$4 sm:$0xff]  }
  0x48   :  { %1292 = vmatpush2.bf16.msra.mxu0 %v3308_v60  ;;  %v3400_v60 = vld [vmem:[#allocation2 + $0x2a0] ss:$8 sps:$4 sm:$0xff]  }
  0x49   :  { %1335 = vmatpush2.bf16.msra.mxu1 %v3309_v61  ;;  %1293 = vmatprep.subr.bf16.mxu0 %v3310_v62  ;;  %v3403_v61 = vld [vmem:[#allocation2 + $0x3a0] ss:$8 sps:$4 sm:$0xff]   ;;  %v3408_v62 = vld [vmem:[#allocation2 + $0x294] ss:$8 sps:$4 sm:$0xff]  }
  0x4a   :  { %1336 = vmatprep.subr.bf16.mxu1 %v3312_v63  ;;  %v3411_v63 = vld [vmem:[#allocation2 + $0x394] ss:$8 sps:$4 sm:$0xff]  }
  0x4c   :  { %1294 = vmatpush2.bf16.msra.mxu0 %v3314_v0  ;;  %v3406_v0 = vld [vmem:[#allocation2 + $0x290] ss:$8 sps:$4 sm:$0xff]  }
  0x4d   :  { %1337 = vmatpush2.bf16.msra.mxu1 %v3315_v1  ;;  %1349 = vmatprep.subr.bf16.mxu0 %v3324_v2  ;;  %v3409_v1 = vld [vmem:[#allocation2 + $0x390] ss:$8 sps:$4 sm:$0xff]   ;;  %v3414_v2 = vld [vmem:[#allocation2 + $0x284] ss:$8 sps:$4 sm:$0xff]  }
  0x4e   :  { %1392 = vmatprep.subr.bf16.mxu1 %v3327_v3  ;;  %v3417_v3 = vld [vmem:[#allocation2 + $0x384] ss:$8 sps:$4 sm:$0xff]  }
  0x4f   :  { %1296 = vmatmul.mubr.bf16.vlgmr.msra.gmra.mxu0 %v3316_v4  ;;  %v3412_v4 = vld [vmem:[#allocation2 + $0x280] ss:$8 sps:$4 sm:$0xff]  }
  0x50   :  { %1339 = vmatmul.mubr.bf16.vlgmr.msra.gmra.mxu1 %v3319_v5  ;;  %1350 = vmatpush1.bf16.msra.mxu0 %v3322_v6  ;;  %v3415_v5 = vld [vmem:[#allocation2 + $0x380] ss:$8 sps:$4 sm:$0xff]   ;;  %v3426_v6 = vld [vmem:[#allocation2 + $0x474] ss:$8 sps:$4 sm:$0xff]  }
  0x51   :  { %1393 = vmatpush1.bf16.msra.mxu1 %v3325_v7  ;;  %1351 = vmatprep.subr.bf16.mxu0 %v3330_v8  ;;  %v3429_v7 = vld [vmem:[#allocation2 + $0x574] ss:$8 sps:$4 sm:$0xff]   ;;  %v3418_v8 = vld [vmem:[%s4162_s0 + $0x10] ss:$48 sps:$4 sm:$0xff]  }
  0x52   :  { %1394 = vmatprep.subr.bf16.mxu1 %v3333_v9  ;;  %1381 = vmatprep.mubr.bf16.mxu0 %v3420_v34  ;;  %v3421_v9 = vld [vmem:[%s4162_s0 + $0x18] ss:$48 sps:$4 sm:$0xff]   ;;  %v3462_v34 = vld [vmem:[#allocation2 + $0x414] ss:$8 sps:$4 sm:$0xff]  }
  0x53   :  { %1424 = vmatprep.mubr.bf16.mxu1 %v3423_v35  ;;  %v3465_v35 = vld [vmem:[#allocation2 + $0x514] ss:$8 sps:$4 sm:$0xff]  }
  0x54   :  { %1352 = vmatpush1.bf16.msra.mxu0 %v3328_v10  ;;  %v3424_v10 = vld [vmem:[#allocation2 + $0x470] ss:$8 sps:$4 sm:$0xff]  }
  0x55   :  { %1395 = vmatpush1.bf16.msra.mxu1 %v3331_v11  ;;  %1353 = vmatprep.subr.bf16.mxu0 %v3336_v12  ;;  %v3427_v11 = vld [vmem:[#allocation2 + $0x570] ss:$8 sps:$4 sm:$0xff]   ;;  %v3432_v12 = vld [vmem:[#allocation2 + $0x464] ss:$8 sps:$4 sm:$0xff]  }
  0x56   :  { %1396 = vmatprep.subr.bf16.mxu1 %v3339_v13  ;;  %v3435_v13 = vld [vmem:[#allocation2 + $0x564] ss:$8 sps:$4 sm:$0xff]  }
  0x58   :  { %1354 = vmatpush1.bf16.msra.mxu0 %v3334_v14  ;;  %v3430_v14 = vld [vmem:[#allocation2 + $0x460] ss:$8 sps:$4 sm:$0xff]  }
  0x59   :  { %1397 = vmatpush1.bf16.msra.mxu1 %v3337_v15  ;;  %1355 = vmatprep.subr.bf16.mxu0 %v3342_v16  ;;  %v3433_v15 = vld [vmem:[#allocation2 + $0x560] ss:$8 sps:$4 sm:$0xff]   ;;  %v3438_v16 = vld [vmem:[#allocation2 + $0x454] ss:$8 sps:$4 sm:$0xff]  }
  0x5a   :  { %1398 = vmatprep.subr.bf16.mxu1 %v3345_v17  ;;  %v3441_v17 = vld [vmem:[#allocation2 + $0x554] ss:$8 sps:$4 sm:$0xff]  }
  0x5c   :  { %1356 = vmatpush1.bf16.msra.mxu0 %v3340_v18  ;;  %v3436_v18 = vld [vmem:[#allocation2 + $0x450] ss:$8 sps:$4 sm:$0xff]  }
  0x5d   :  { %1399 = vmatpush1.bf16.msra.mxu1 %v3343_v19  ;;  %1357 = vmatprep.subr.bf16.mxu0 %v3348_v20  ;;  %v3762_v19 = vld [vmem:[%s4162_s0 + $0x24] ss:$48 sps:$4 sm:$0xff]   ;;  %v3439_v20 = vld [vmem:[#allocation2 + $0x550] ss:$8 sps:$4 sm:$0xff]  }
  0x5e   :  { %1400 = vmatprep.subr.bf16.mxu1 %v3351_v21  ;;  %v3767_v21 = vld [vmem:[%s4162_s0 + $0x2c] ss:$48 sps:$4 sm:$0xff]  }
  0x60   :  { %1358 = vmatpush1.bf16.msra.mxu0 %v3346_v22  ;;  %v3444_v22 = vld [vmem:[#allocation2 + $0x444] ss:$8 sps:$4 sm:$0xff]  }
  0x61   :  { %1401 = vmatpush1.bf16.msra.mxu1 %v3349_v23  ;;  %1359 = vmatprep.subr.bf16.mxu0 %v3354_v24  ;;  %v3447_v23 = vld [vmem:[#allocation2 + $0x544] ss:$8 sps:$4 sm:$0xff]   ;;  %v3442_v24 = vld [vmem:[#allocation2 + $0x440] ss:$8 sps:$4 sm:$0xff]  }
  0x62   :  { %1402 = vmatprep.subr.bf16.mxu1 %v3357_v25  ;;  %v3445_v25 = vld [vmem:[#allocation2 + $0x540] ss:$8 sps:$4 sm:$0xff]  }
  0x64   :  { %1360 = vmatpush1.bf16.msra.mxu0 %v3352_v26  ;;  %v3450_v26 = vld [vmem:[#allocation2 + $0x434] ss:$8 sps:$4 sm:$0xff]  }
  0x65   :  { %1403 = vmatpush1.bf16.msra.mxu1 %v3355_v27  ;;  %1361 = vmatprep.subr.bf16.mxu0 %v3360_v28  ;;  %v3453_v27 = vld [vmem:[#allocation2 + $0x534] ss:$8 sps:$4 sm:$0xff]   ;;  %v3448_v28 = vld [vmem:[#allocation2 + $0x430] ss:$8 sps:$4 sm:$0xff]  }
  0x66   :  { %1404 = vmatprep.subr.bf16.mxu1 %v3363_v29  ;;  %v3451_v29 = vld [vmem:[#allocation2 + $0x530] ss:$8 sps:$4 sm:$0xff]  }
  0x68   :  { %1362 = vmatpush1.bf16.msra.mxu0 %v3358_v30  ;;  %v3456_v30 = vld [vmem:[#allocation2 + $0x424] ss:$8 sps:$4 sm:$0xff]  }
  0x69   :  { %1405 = vmatpush1.bf16.msra.mxu1 %v3361_v31  ;;  %1363 = vmatprep.subr.bf16.mxu0 %v3366_v32  ;;  %v3459_v31 = vld [vmem:[#allocation2 + $0x524] ss:$8 sps:$4 sm:$0xff]   ;;  %v3454_v32 = vld [vmem:[#allocation2 + $0x420] ss:$8 sps:$4 sm:$0xff]  }
  0x6a   :  { %1406 = vmatprep.subr.bf16.mxu1 %v3369_v33  ;;  %v3457_v33 = vld [vmem:[#allocation2 + $0x520] ss:$8 sps:$4 sm:$0xff]  }
  0x6c   :  { %1364 = vmatpush1.bf16.msra.mxu0 %v3364_v36  ;;  %v3460_v36 = vld [vmem:[#allocation2 + $0x410] ss:$8 sps:$4 sm:$0xff]  }
  0x6d   :  { %1407 = vmatpush1.bf16.msra.mxu1 %v3367_v37  ;;  %1365 = vmatprep.subr.bf16.mxu0 %v3372_v38  ;;  %v3463_v37 = vld [vmem:[#allocation2 + $0x510] ss:$8 sps:$4 sm:$0xff]   ;;  %v3468_v38 = vld [vmem:[#allocation2 + $0x404] ss:$8 sps:$4 sm:$0xff]  }
  0x6e   :  { %1408 = vmatprep.subr.bf16.mxu1 %v3375_v39  ;;  %v3471_v39 = vld [vmem:[#allocation2 + $0x504] ss:$8 sps:$4 sm:$0xff]  }
  0x70   :  { %1366 = vmatpush2.bf16.msra.mxu0 %v3370_v40  ;;  %v3466_v40 = vld [vmem:[#allocation2 + $0x400] ss:$8 sps:$4 sm:$0xff]  }
  0x71   :  { %1409 = vmatpush2.bf16.msra.mxu1 %v3373_v41  ;;  %1367 = vmatprep.subr.bf16.mxu0 %v3378_v42  ;;  %v3469_v41 = vld [vmem:[#allocation2 + $0x500] ss:$8 sps:$4 sm:$0xff]   ;;  %v3474_v42 = vld [vmem:[#allocation2 + $0x4f4] ss:$8 sps:$4 sm:$0xff]  }
  0x72   :  { %1410 = vmatprep.subr.bf16.mxu1 %v3381_v43  ;;  %v3477_v43 = vld [vmem:[#allocation2 + $0x5f4] ss:$8 sps:$4 sm:$0xff]  }
  0x74   :  { %1368 = vmatpush2.bf16.msra.mxu0 %v3376_v44  ;;  %v3472_v44 = vld [vmem:[#allocation2 + $0x4f0] ss:$8 sps:$4 sm:$0xff]  }
  0x75   :  { %1411 = vmatpush2.bf16.msra.mxu1 %v3379_v45  ;;  %1369 = vmatprep.subr.bf16.mxu0 %v3384_v46  ;;  %v3475_v45 = vld [vmem:[#allocation2 + $0x5f0] ss:$8 sps:$4 sm:$0xff]   ;;  %v3480_v46 = vld [vmem:[#allocation2 + $0x4e4] ss:$8 sps:$4 sm:$0xff]  }
  0x76   :  { %1412 = vmatprep.subr.bf16.mxu1 %v3387_v47  ;;  %v3483_v47 = vld [vmem:[#allocation2 + $0x5e4] ss:$8 sps:$4 sm:$0xff]  }
  0x78   :  { %1370 = vmatpush2.bf16.msra.mxu0 %v3382_v48  ;;  %v3478_v48 = vld [vmem:[#allocation2 + $0x4e0] ss:$8 sps:$4 sm:$0xff]  }
  0x79   :  { %1413 = vmatpush2.bf16.msra.mxu1 %v3385_v49  ;;  %1371 = vmatprep.subr.bf16.mxu0 %v3390_v50  ;;  %v3481_v49 = vld [vmem:[#allocation2 + $0x5e0] ss:$8 sps:$4 sm:$0xff]   ;;  %v3486_v50 = vld [vmem:[#allocation2 + $0x4d4] ss:$8 sps:$4 sm:$0xff]  }
  0x7a   :  { %1414 = vmatprep.subr.bf16.mxu1 %v3393_v51  ;;  %v3489_v51 = vld [vmem:[#allocation2 + $0x5d4] ss:$8 sps:$4 sm:$0xff]  }
  0x7c   :  { %1372 = vmatpush2.bf16.msra.mxu0 %v3388_v52  ;;  %v3484_v52 = vld [vmem:[#allocation2 + $0x4d0] ss:$8 sps:$4 sm:$0xff]  }
  0x7d   :  { %1415 = vmatpush2.bf16.msra.mxu1 %v3391_v53  ;;  %1373 = vmatprep.subr.bf16.mxu0 %v3396_v54  ;;  %v3487_v53 = vld [vmem:[#allocation2 + $0x5d0] ss:$8 sps:$4 sm:$0xff]   ;;  %v3492_v54 = vld [vmem:[#allocation2 + $0x4c4] ss:$8 sps:$4 sm:$0xff]  }
  0x7e   :  { %1416 = vmatprep.subr.bf16.mxu1 %v3399_v55  ;;  %v3495_v55 = vld [vmem:[#allocation2 + $0x5c4] ss:$8 sps:$4 sm:$0xff]  }
  0x80   :  { %1374 = vmatpush2.bf16.msra.mxu0 %v3394_v56  ;;  %v3490_v56 = vld [vmem:[#allocation2 + $0x4c0] ss:$8 sps:$4 sm:$0xff]  }
  0x81   :  { %1417 = vmatpush2.bf16.msra.mxu1 %v3397_v57  ;;  %1375 = vmatprep.subr.bf16.mxu0 %v3402_v58  ;;  %v3493_v57 = vld [vmem:[#allocation2 + $0x5c0] ss:$8 sps:$4 sm:$0xff]   ;;  %v3498_v58 = vld [vmem:[#allocation2 + $0x4b4] ss:$8 sps:$4 sm:$0xff]  }
  0x82   :  { %1418 = vmatprep.subr.bf16.mxu1 %v3405_v59  ;;  %v3501_v59 = vld [vmem:[#allocation2 + $0x5b4] ss:$8 sps:$4 sm:$0xff]  }
  0x84   :  { %1376 = vmatpush2.bf16.msra.mxu0 %v3400_v60  ;;  %v3496_v60 = vld [vmem:[#allocation2 + $0x4b0] ss:$8 sps:$4 sm:$0xff]  }
  0x85   :  { %1419 = vmatpush2.bf16.msra.mxu1 %v3403_v61  ;;  %1377 = vmatprep.subr.bf16.mxu0 %v3408_v62  ;;  %v3499_v61 = vld [vmem:[#allocation2 + $0x5b0] ss:$8 sps:$4 sm:$0xff]   ;;  %v3504_v62 = vld [vmem:[#allocation2 + $0x4a4] ss:$8 sps:$4 sm:$0xff]  }
  0x86   :  { %1420 = vmatprep.subr.bf16.mxu1 %v3411_v63  ;;  %v3507_v63 = vld [vmem:[#allocation2 + $0x5a4] ss:$8 sps:$4 sm:$0xff]  }
  0x88   :  { %1378 = vmatpush2.bf16.msra.mxu0 %v3406_v0  ;;  %v3502_v0 = vld [vmem:[#allocation2 + $0x4a0] ss:$8 sps:$4 sm:$0xff]  }
  0x89   :  { %1421 = vmatpush2.bf16.msra.mxu1 %v3409_v1  ;;  %1379 = vmatprep.subr.bf16.mxu0 %v3414_v2  ;;  %v3505_v1 = vld [vmem:[#allocation2 + $0x5a0] ss:$8 sps:$4 sm:$0xff]   ;;  %v3510_v2 = vld [vmem:[#allocation2 + $0x494] ss:$8 sps:$4 sm:$0xff]  }
  0x8a   :  { %1422 = vmatprep.subr.bf16.mxu1 %v3417_v3  ;;  %v3513_v3 = vld [vmem:[#allocation2 + $0x594] ss:$8 sps:$4 sm:$0xff]  }
  0x8c   :  { %1380 = vmatpush2.bf16.msra.mxu0 %v3412_v4  ;;  %v3508_v4 = vld [vmem:[#allocation2 + $0x490] ss:$8 sps:$4 sm:$0xff]  }
  0x8d   :  { %1423 = vmatpush2.bf16.msra.mxu1 %v3415_v5  ;;  %1435 = vmatprep.subr.bf16.mxu0 %v3426_v6  ;;  %v3511_v5 = vld [vmem:[#allocation2 + $0x590] ss:$8 sps:$4 sm:$0xff]   ;;  %v3516_v6 = vld [vmem:[#allocation2 + $0x484] ss:$8 sps:$4 sm:$0xff]  }
  0x8e   :  { %1478 = vmatprep.subr.bf16.mxu1 %v3429_v7  ;;  %v3519_v7 = vld [vmem:[#allocation2 + $0x584] ss:$8 sps:$4 sm:$0xff]  }
  0x8f   :  { %1382 = vmatmul.mubr.bf16.vlgmr.msra.gmra.mxu0 %v3418_v8  ;;  %v3514_v8 = vld [vmem:[#allocation2 + $0x480] ss:$8 sps:$4 sm:$0xff]  }
  0x90   :  { %1425 = vmatmul.mubr.bf16.vlgmr.msra.gmra.mxu1 %v3421_v9  ;;  %1436 = vmatpush1.bf16.msra.mxu0 %v3424_v10  ;;  %v3517_v9 = vld [vmem:[#allocation2 + $0x580] ss:$8 sps:$4 sm:$0xff]   ;;  %v3526_v10 = vld [vmem:[%s4165_s3 + $0x78] sm:$0xff]  }
  0x91   :  { %1479 = vmatpush1.bf16.msra.mxu1 %v3427_v11  ;;  %1437 = vmatprep.subr.bf16.mxu0 %v3432_v12  ;;  %v3777_v11 = vld [vmem:[%s4162_s0 + $0x20] ss:$48 sps:$4 sm:$0xff]   ;;  %v3782_v12 = vld [vmem:[%s4162_s0 + $0x28] ss:$48 sps:$4 sm:$0xff]  }
  0x92   :  { %1480 = vmatprep.subr.bf16.mxu1 %v3435_v13  ;;  %1467 = vmatprep.mubr.bf16.mxu0 %v3762_v19  ;;  %v3528_v13 = vld [vmem:[%s4165_s3 + $0xf8] sm:$0xff]  }
  0x93   :  { %1510 = vmatprep.mubr.bf16.mxu1 %v3767_v21 }
  0x94   :  { %1438 = vmatpush1.bf16.msra.mxu0 %v3430_v14  ;;  %v3527_v14 = vld [vmem:[%s4165_s3 + $0x38] sm:$0xff]  }
  0x95   :  { %1481 = vmatpush1.bf16.msra.mxu1 %v3433_v15  ;;  %1439 = vmatprep.subr.bf16.mxu0 %v3438_v16  ;;  %v3529_v15 = vld [vmem:[%s4165_s3 + $0xb8] sm:$0xff]   ;;  %v3530_v16 = vld [vmem:[%s4165_s3 + $0x70] sm:$0xff]  }
  0x96   :  { %1482 = vmatprep.subr.bf16.mxu1 %v3441_v17  ;;  %v3532_v17 = vld [vmem:[%s4165_s3 + $0xf0] sm:$0xff]  }
  0x98   :  { %1440 = vmatpush1.bf16.msra.mxu0 %v3436_v18  ;;  %v3531_v18 = vld [vmem:[%s4165_s3 + $0x30] sm:$0xff]  }
  0x99   :  { %1483 = vmatpush1.bf16.msra.mxu1 %v3439_v20  ;;  %1441 = vmatprep.subr.bf16.mxu0 %v3444_v22  ;;  %v3533_v20 = vld [vmem:[%s4165_s3 + $0xb0] sm:$0xff]   ;;  %v3534_v22 = vld [vmem:[%s4165_s3 + $0x68] sm:$0xff]  }
  0x9a   :  { %1484 = vmatprep.subr.bf16.mxu1 %v3447_v23  ;;  %v3536_v23 = vld [vmem:[%s4165_s3 + $0xe8] sm:$0xff]  }
  0x9c   :  { %1442 = vmatpush1.bf16.msra.mxu0 %v3442_v24  ;;  %v3535_v24 = vld [vmem:[%s4165_s3 + $0x28] sm:$0xff]  }
  0x9d   :  { %1485 = vmatpush1.bf16.msra.mxu1 %v3445_v25  ;;  %1443 = vmatprep.subr.bf16.mxu0 %v3450_v26  ;;  %v3638_v25 = vld [vmem:[%s4162_s0 + $0x4] ss:$48 sps:$4 sm:$0xff]   ;;  %v3639_v26 = vld [vmem:[%s4162_s0 + $0xc] ss:$48 sps:$4 sm:$0xff]  }
  0x9e   :  { %1486 = vmatprep.subr.bf16.mxu1 %v3453_v27  ;;  %v3537_v27 = vld [vmem:[%s4165_s3 + $0xa8] sm:$0xff]  }
  0xa0   :  { %1444 = vmatpush1.bf16.msra.mxu0 %v3448_v28  ;;  %v3538_v28 = vld [vmem:[%s4165_s3 + $0x60] sm:$0xff]  }
  0xa1   :  { %1487 = vmatpush1.bf16.msra.mxu1 %v3451_v29  ;;  %1445 = vmatprep.subr.bf16.mxu0 %v3456_v30  ;;  %v3540_v29 = vld [vmem:[%s4165_s3 + $0xe0] sm:$0xff]  }
  0xa2   :  { %1488 = vmatprep.subr.bf16.mxu1 %v3459_v31  ;;  %v3539_v30 = vld [vmem:[%s4165_s3 + $0x20] sm:$0xff]  }
  0xa3   :  { %v3541_v31 = vld [vmem:[%s4165_s3 + $0xa0] sm:$0xff]  }
  0xa4   :  { %1446 = vmatpush1.bf16.msra.mxu0 %v3454_v32  ;;  %v3542_v32 = vld [vmem:[%s4165_s3 + $0x58] sm:$0xff]  }
  0xa5   :  { %1489 = vmatpush1.bf16.msra.mxu1 %v3457_v33  ;;  %1447 = vmatprep.subr.bf16.mxu0 %v3462_v34  ;;  %v3544_v33 = vld [vmem:[%s4165_s3 + $0xd8] sm:$0xff]  }
  0xa6   :  { %1490 = vmatprep.subr.bf16.mxu1 %v3465_v35  ;;  %v3543_v34 = vld [vmem:[%s4165_s3 + $0x18] sm:$0xff]  }
  0xa7   :  { %v3545_v35 = vld [vmem:[%s4165_s3 + $0x98] sm:$0xff]  }
  0xa8   :  { %1448 = vmatpush1.bf16.msra.mxu0 %v3460_v36  ;;  %v3546_v36 = vld [vmem:[%s4165_s3 + $0x50] sm:$0xff]  }
  0xa9   :  { %1491 = vmatpush1.bf16.msra.mxu1 %v3463_v37  ;;  %1449 = vmatprep.subr.bf16.mxu0 %v3468_v38  ;;  %v3548_v37 = vld [vmem:[%s4165_s3 + $0xd0] sm:$0xff]  }
  0xaa   :  { %1492 = vmatprep.subr.bf16.mxu1 %v3471_v39  ;;  %v3547_v38 = vld [vmem:[%s4165_s3 + $0x10] sm:$0xff]  }
  0xab   :  { %v3549_v39 = vld [vmem:[%s4165_s3 + $0x90] sm:$0xff]  }
  0xac   :  { %1450 = vmatpush1.bf16.msra.mxu0 %v3466_v40  ;;  %v3550_v40 = vld [vmem:[%s4165_s3 + $0x48] sm:$0xff]  }
  0xad   :  { %1493 = vmatpush1.bf16.msra.mxu1 %v3469_v41  ;;  %1451 = vmatprep.subr.bf16.mxu0 %v3474_v42  ;;  %v3552_v41 = vld [vmem:[%s4165_s3 + $0xc8] sm:$0xff]  }
  0xae   :  { %1494 = vmatprep.subr.bf16.mxu1 %v3477_v43  ;;  %v3551_v42 = vld [vmem:[%s4165_s3 + $0x8] sm:$0xff]  }
  0xaf   :  { %v3553_v43 = vld [vmem:[%s4165_s3 + $0x88] sm:$0xff]  }
  0xb0   :  { %1452 = vmatpush2.bf16.msra.mxu0 %v3472_v44  ;;  %v3554_v44 = vld [vmem:[%s4165_s3 + $0x40] sm:$0xff]  }
  0xb1   :  { %1495 = vmatpush2.bf16.msra.mxu1 %v3475_v45  ;;  %1453 = vmatprep.subr.bf16.mxu0 %v3480_v46  ;;  %v3556_v45 = vld [vmem:[%s4165_s3 + $0xc0] sm:$0xff]  }
  0xb2   :  { %1496 = vmatprep.subr.bf16.mxu1 %v3483_v47  ;;  %v3555_v46 = vld [vmem:[%s4165_s3] sm:$0xff]  }
  0xb3   :  { %v3557_v47 = vld [vmem:[%s4165_s3 + $0x80] sm:$0xff]  }
  0xb4   :  { %1454 = vmatpush2.bf16.msra.mxu0 %v3478_v48  ;;  %v3558_v48 = vld [vmem:[%s4165_s3 + $0x178] sm:$0xff]  }
  0xb5   :  { %1497 = vmatpush2.bf16.msra.mxu1 %v3481_v49  ;;  %1455 = vmatprep.subr.bf16.mxu0 %v3486_v50  ;;  %v3560_v49 = vld [vmem:[%s4165_s3 + $0x1f8] sm:$0xff]  }
  0xb6   :  { %1498 = vmatprep.subr.bf16.mxu1 %v3489_v51  ;;  %v3559_v50 = vld [vmem:[%s4165_s3 + $0x138] sm:$0xff]  }
  0xb7   :  { %v3561_v51 = vld [vmem:[%s4165_s3 + $0x1b8] sm:$0xff]  }
  0xb8   :  { %1456 = vmatpush2.bf16.msra.mxu0 %v3484_v52  ;;  %v3562_v52 = vld [vmem:[%s4165_s3 + $0x170] sm:$0xff]  }
  0xb9   :  { %1499 = vmatpush2.bf16.msra.mxu1 %v3487_v53  ;;  %1457 = vmatprep.subr.bf16.mxu0 %v3492_v54  ;;  %v3564_v53 = vld [vmem:[%s4165_s3 + $0x1f0] sm:$0xff]  }
  0xba   :  { %1500 = vmatprep.subr.bf16.mxu1 %v3495_v55  ;;  %v3563_v54 = vld [vmem:[%s4165_s3 + $0x130] sm:$0xff]  }
  0xbb   :  { %v3640_v55 = vld [vmem:[%s4162_s0] ss:$48 sps:$4 sm:$0xff]  }
  0xbc   :  { %1458 = vmatpush2.bf16.msra.mxu0 %v3490_v56  ;;  %v3641_v56 = vld [vmem:[%s4162_s0 + $0x8] ss:$48 sps:$4 sm:$0xff]  }
  0xbd   :  { %1501 = vmatpush2.bf16.msra.mxu1 %v3493_v57  ;;  %1459 = vmatprep.subr.bf16.mxu0 %v3498_v58  ;;  %v3565_v57 = vld [vmem:[%s4165_s3 + $0x1b0] sm:$0xff]   ;;  %v3566_v58 = vld [vmem:[%s4165_s3 + $0x168] sm:$0xff]  }
  0xbe   :  { %1502 = vmatprep.subr.bf16.mxu1 %v3501_v59  ;;  %v3568_v59 = vld [vmem:[%s4165_s3 + $0x1e8] sm:$0xff]  }
  0xc0   :  { %1460 = vmatpush2.bf16.msra.mxu0 %v3496_v60  ;;  %v3567_v60 = vld [vmem:[%s4165_s3 + $0x128] sm:$0xff]  }
  0xc1   :  { %1503 = vmatpush2.bf16.msra.mxu1 %v3499_v61  ;;  %1461 = vmatprep.subr.bf16.mxu0 %v3504_v62  ;;  %v3642_v61 = vld [vmem:[%s4162_s0 + $0x14] ss:$48 sps:$4 sm:$0xff]   ;;  %v3643_v62 = vld [vmem:[%s4162_s0 + $0x1c] ss:$48 sps:$4 sm:$0xff]  }
  0xc2   :  { %1504 = vmatprep.subr.bf16.mxu1 %v3507_v63  ;;  %v3569_v63 = vld [vmem:[%s4165_s3 + $0x1a8] sm:$0xff]  }
  0xc4   :  { %1462 = vmatpush2.bf16.msra.mxu0 %v3502_v0  ;;  %v3570_v0 = vld [vmem:[%s4165_s3 + $0x160] sm:$0xff]  }
  0xc5   :  { %1505 = vmatpush2.bf16.msra.mxu1 %v3505_v1  ;;  %1463 = vmatprep.subr.bf16.mxu0 %v3510_v2  ;;  %v3572_v1 = vld [vmem:[%s4165_s3 + $0x1e0] sm:$0xff]  }
  0xc6   :  { %1506 = vmatprep.subr.bf16.mxu1 %v3513_v3  ;;  %v3571_v2 = vld [vmem:[%s4165_s3 + $0x120] sm:$0xff]  }
  0xc7   :  { %v3573_v3 = vld [vmem:[%s4165_s3 + $0x1a0] sm:$0xff]  }
  0xc8   :  { %1464 = vmatpush2.bf16.msra.mxu0 %v3508_v4  ;;  %v3574_v4 = vld [vmem:[%s4165_s3 + $0x158] sm:$0xff]  }
  0xc9   :  { %1507 = vmatpush2.bf16.msra.mxu1 %v3511_v5  ;;  %1465 = vmatprep.subr.bf16.mxu0 %v3516_v6  ;;  %v3576_v5 = vld [vmem:[%s4165_s3 + $0x1d8] sm:$0xff]  }
  0xca   :  { %1508 = vmatprep.subr.bf16.mxu1 %v3519_v7  ;;  %v3575_v6 = vld [vmem:[%s4165_s3 + $0x118] sm:$0xff]  }
  0xcb   :  { %v3577_v7 = vld [vmem:[%s4165_s3 + $0x198] sm:$0xff]  }
  0xcc   :  { %1466 = vmatpush2.bf16.msra.mxu0 %v3514_v8  ;;  %v3578_v8 = vld [vmem:[%s4165_s3 + $0x150] sm:$0xff]  }
  0xcd   :  { %1509 = vmatpush2.bf16.msra.mxu1 %v3517_v9  ;;  %3062 = vmatprep.subr.bf16.mxu0 %v3526_v10  ;;  %v3580_v9 = vld [vmem:[%s4165_s3 + $0x1d0] sm:$0xff]  }
  0xce   :  { %3084 = vmatprep.subr.bf16.mxu1 %v3528_v13  ;;  %v3579_v10 = vld [vmem:[%s4165_s3 + $0x110] sm:$0xff]  }
  0xcf   :  { %1468 = vmatmul.mubr.bf16.vlgmr.msra.gmra.mxu0 %v3777_v11  ;;  %v3581_v13 = vld [vmem:[%s4165_s3 + $0x190] sm:$0xff]  }
  0xd0   :  { %1511 = vmatmul.mubr.bf16.vlgmr.msra.gmra.mxu1 %v3782_v12  ;;  %3063 = vmatpush3.bf16.msra.mxu0 %v3527_v14  ;;  %v3582_v14 = vld [vmem:[%s4165_s3 + $0x148] sm:$0xff]  }
  0xd1   :  { %3085 = vmatpush3.bf16.msra.mxu1 %v3529_v15  ;;  %3064 = vmatprep.subr.bf16.mxu0 %v3530_v16  ;;  %v3584_v15 = vld [vmem:[%s4165_s3 + $0x1c8] sm:$0xff]  }
  0xd2   :  { %3086 = vmatprep.subr.bf16.mxu1 %v3532_v17  ;;  %2321 = vmatprep.mubr.bf16.mxu0 %v3638_v25  ;;  %v3583_v16 = vld [vmem:[%s4165_s3 + $0x108] sm:$0xff]   ;;  %v3592_v25 = vld [vmem:[%s4165_s3 + $0x2f8] sm:$0xff]  }
  0xd3   :  { %2362 = vmatprep.mubr.bf16.mxu1 %v3639_v26  ;;  %v3585_v17 = vld [vmem:[%s4165_s3 + $0x188] sm:$0xff]   ;;  %v3591_v26 = vld [vmem:[%s4165_s3 + $0x238] sm:$0xff]  }
  0xd4   :  { %3065 = vmatpush3.bf16.msra.mxu0 %v3531_v18  ;;  %v3586_v18 = vld [vmem:[%s4165_s3 + $0x140] sm:$0xff]  }
  0xd5   :  { %3087 = vmatpush3.bf16.msra.mxu1 %v3533_v20  ;;  %3066 = vmatprep.subr.bf16.mxu0 %v3534_v22  ;;  %v3588_v20 = vld [vmem:[%s4165_s3 + $0x1c0] sm:$0xff]  }
  0xd6   :  { %3088 = vmatprep.subr.bf16.mxu1 %v3536_v23  ;;  %v3587_v22 = vld [vmem:[%s4165_s3 + $0x100] sm:$0xff]  }
  0xd7   :  { %v3589_v23 = vld [vmem:[%s4165_s3 + $0x180] sm:$0xff]  }
  0xd8   :  { %3067 = vmatpush3.bf16.msra.mxu0 %v3535_v24  ;;  %v3590_v24 = vld [vmem:[%s4165_s3 + $0x278] sm:$0xff]  }
  0xd9   :  { %3089 = vmatpush3.bf16.msra.mxu1 %v3537_v27  ;;  %3068 = vmatprep.subr.bf16.mxu0 %v3538_v28  ;;  %v3593_v27 = vld [vmem:[%s4165_s3 + $0x2b8] sm:$0xff]   ;;  %v3594_v28 = vld [vmem:[%s4165_s3 + $0x270] sm:$0xff]  }
  0xda   :  { %3090 = vmatprep.subr.bf16.mxu1 %v3540_v29  ;;  %v3596_v29 = vld [vmem:[%s4165_s3 + $0x2f0] sm:$0xff]  }
  0xdc   :  { %3069 = vmatpush3.bf16.msra.mxu0 %v3539_v30  ;;  %v3644_v30 = vld [vmem:[%s4162_s0 + $0x10] ss:$48 sps:$4 sm:$0xff]  }
  0xdd   :  { %3091 = vmatpush3.bf16.msra.mxu1 %v3541_v31  ;;  %3070 = vmatprep.subr.bf16.mxu0 %v3542_v32  ;;  %v3645_v31 = vld [vmem:[%s4162_s0 + $0x18] ss:$48 sps:$4 sm:$0xff]   ;;  %v3595_v32 = vld [vmem:[%s4165_s3 + $0x230] sm:$0xff]  }
  0xde   :  { %3092 = vmatprep.subr.bf16.mxu1 %v3544_v33  ;;  %v3597_v33 = vld [vmem:[%s4165_s3 + $0x2b0] sm:$0xff]  }
  0xe0   :  { %3071 = vmatpush3.bf16.msra.mxu0 %v3543_v34  ;;  %v3598_v34 = vld [vmem:[%s4165_s3 + $0x268] sm:$0xff]  }
  0xe1   :  { %3093 = vmatpush3.bf16.msra.mxu1 %v3545_v35  ;;  %3072 = vmatprep.subr.bf16.mxu0 %v3546_v36  ;;  %v3600_v35 = vld [vmem:[%s4165_s3 + $0x2e8] sm:$0xff]  }
  0xe2   :  { %3094 = vmatprep.subr.bf16.mxu1 %v3548_v37  ;;  %v3599_v36 = vld [vmem:[%s4165_s3 + $0x228] sm:$0xff]  }
  0xe3   :  { %v3601_v37 = vld [vmem:[%s4165_s3 + $0x2a8] sm:$0xff]  }
  0xe4   :  { %3073 = vmatpush3.bf16.msra.mxu0 %v3547_v38  ;;  %v3602_v38 = vld [vmem:[%s4165_s3 + $0x260] sm:$0xff]  }
  0xe5   :  { %3095 = vmatpush3.bf16.msra.mxu1 %v3549_v39  ;;  %3074 = vmatprep.subr.bf16.mxu0 %v3550_v40  ;;  %v3605_v39 = vld [vmem:[%s4165_s3 + $0x2a0] sm:$0xff]   ;;  %v3606_v40 = vld [vmem:[%s4165_s3 + $0x258] sm:$0xff]  }
  0xe6   :  { %3096 = vmatprep.subr.bf16.mxu1 %v3552_v41  ;;  %v3608_v41 = vld [vmem:[%s4165_s3 + $0x2d8] sm:$0xff]  }
  0xe8   :  { %3075 = vmatpush3.bf16.msra.mxu0 %v3551_v42  ;;  %v3607_v42 = vld [vmem:[%s4165_s3 + $0x218] sm:$0xff]  }
  0xe9   :  { %3097 = vmatpush3.bf16.msra.mxu1 %v3553_v43  ;;  %3076 = vmatprep.subr.bf16.mxu0 %v3554_v44  ;;  %v3609_v43 = vld [vmem:[%s4165_s3 + $0x298] sm:$0xff]   ;;  %v3610_v44 = vld [vmem:[%s4165_s3 + $0x250] sm:$0xff]  }
  0xea   :  { %3098 = vmatprep.subr.bf16.mxu1 %v3556_v45  ;;  %v3612_v45 = vld [vmem:[%s4165_s3 + $0x2d0] sm:$0xff]  }
  0xec   :  { %3077 = vmatpush3.bf16.msra.mxu0 %v3555_v46  ;;  %v3611_v46 = vld [vmem:[%s4165_s3 + $0x210] sm:$0xff]  }
  0xed   :  { %3099 = vmatpush3.bf16.msra.mxu1 %v3557_v47  ;;  %3106 = vmatprep.subr.bf16.mxu0 %v3558_v48  ;;  %v3613_v47 = vld [vmem:[%s4165_s3 + $0x290] sm:$0xff]   ;;  %v3614_v48 = vld [vmem:[%s4165_s3 + $0x248] sm:$0xff]  }
  0xee   :  { %3128 = vmatprep.subr.bf16.mxu1 %v3560_v49  ;;  %v3616_v49 = vld [vmem:[%s4165_s3 + $0x2c8] sm:$0xff]  }
  0xef   :  { %2322 = vmatmul.mubr.bf16.vlgmr.msra.gmra.mxu0 %v3640_v55  ;;  %v3621_v55 = vld [vmem:[%s4165_s3 + $0x280] sm:$0xff]  }
  0xf0   :  { %2363 = vmatmul.mubr.bf16.vlgmr.msra.gmra.mxu1 %v3641_v56  ;;  %3107 = vmatpush3.bf16.msra.mxu0 %v3559_v50  ;;  %v3615_v50 = vld [vmem:[%s4165_s3 + $0x208] sm:$0xff]   ;;  %v3622_v56 = vld [vmem:[%s4166_s4 + $0x78] sm:$0xff]  }
  0xf1   :  { %3129 = vmatpush3.bf16.msra.mxu1 %v3561_v51  ;;  %3108 = vmatprep.subr.bf16.mxu0 %v3562_v52  ;;  %v3617_v51 = vld [vmem:[%s4165_s3 + $0x288] sm:$0xff]   ;;  %v3618_v52 = vld [vmem:[%s4165_s3 + $0x240] sm:$0xff]  }
  0xf2   :  { %3130 = vmatprep.subr.bf16.mxu1 %v3564_v53  ;;  %2403 = vmatprep.mubr.bf16.mxu0 %v3642_v61  ;;  %v3620_v53 = vld [vmem:[%s4165_s3 + $0x2c0] sm:$0xff]   ;;  %v3627_v61 = vld [vmem:[%s4166_s4 + $0x28] sm:$0xff]  }
  0xf3   :  { %2444 = vmatprep.mubr.bf16.mxu1 %v3643_v62  ;;  %v3630_v62 = vld [vmem:[%s4166_s4 + $0x58] sm:$0xff]  }
  0xf4   :  { %3109 = vmatpush3.bf16.msra.mxu0 %v3563_v54  ;;  %v3619_v54 = vld [vmem:[%s4165_s3 + $0x200] sm:$0xff]  }
  0xf5   :  { %3131 = vmatpush3.bf16.msra.mxu1 %v3565_v57  ;;  %3110 = vmatprep.subr.bf16.mxu0 %v3566_v58  ;;  %v3623_v57 = vld [vmem:[%s4166_s4 + $0x38] sm:$0xff]   ;;  %v3624_v58 = vld [vmem:[%s4166_s4 + $0x70] sm:$0xff]  }
  0xf6   :  { %3132 = vmatprep.subr.bf16.mxu1 %v3568_v59  ;;  %v3625_v59 = vld [vmem:[%s4166_s4 + $0x30] sm:$0xff]  }
  0xf8   :  { %3111 = vmatpush3.bf16.msra.mxu0 %v3567_v60  ;;  %v3626_v60 = vld [vmem:[%s4166_s4 + $0x68] sm:$0xff]  }
  0xf9   :  { %3133 = vmatpush3.bf16.msra.mxu1 %v3569_v63  ;;  %3112 = vmatprep.subr.bf16.mxu0 %v3570_v0  ;;  %v3631_v63 = vld [vmem:[%s4166_s4 + $0x18] sm:$0xff]   ;;  %v3632_v0 = vld [vmem:[%s4166_s4 + $0x50] sm:$0xff]  }
  0xfa   :  { %3134 = vmatprep.subr.bf16.mxu1 %v3572_v1  ;;  %v3633_v1 = vld [vmem:[%s4166_s4 + $0x10] sm:$0xff]  }
  0xfc   :  { %3113 = vmatpush3.bf16.msra.mxu0 %v3571_v2  ;;  %v3634_v2 = vld [vmem:[%s4166_s4 + $0x48] sm:$0xff]  }
  0xfd   :  { %3135 = vmatpush3.bf16.msra.mxu1 %v3573_v3  ;;  %3114 = vmatprep.subr.bf16.mxu0 %v3574_v4  ;;  %v3635_v3 = vld [vmem:[%s4166_s4 + $0x8] sm:$0xff]   ;;  %v3636_v4 = vld [vmem:[%s4166_s4 + $0x40] sm:$0xff]  }
  0xfe   :  { %3136 = vmatprep.subr.bf16.mxu1 %v3576_v5  ;;  %v3637_v5 = vld [vmem:[%s4166_s4] sm:$0xff]  }
 0x100   :  { %3115 = vmatpush3.bf16.msra.mxu0 %v3575_v6 }
 0x101   :  { %3137 = vmatpush3.bf16.msra.mxu1 %v3577_v7  ;;  %3116 = vmatprep.subr.bf16.mxu0 %v3578_v8 }
 0x102   :  { %3138 = vmatprep.subr.bf16.mxu1 %v3580_v9 }
 0x104   :  { %3117 = vmatpush3.bf16.msra.mxu0 %v3579_v10 }
 0x105   :  { %3139 = vmatpush3.bf16.msra.mxu1 %v3581_v13  ;;  %3118 = vmatprep.subr.bf16.mxu0 %v3582_v14 }
 0x106   :  { %3140 = vmatprep.subr.bf16.mxu1 %v3584_v15 }
 0x108   :  { %3119 = vmatpush3.bf16.msra.mxu0 %v3583_v16 }
 0x109   :  { %3141 = vmatpush3.bf16.msra.mxu1 %v3585_v17  ;;  %3120 = vmatprep.subr.bf16.mxu0 %v3586_v18 }
 0x10a   :  { %3142 = vmatprep.subr.bf16.mxu1 %v3588_v20 }
 0x10c   :  { %3121 = vmatpush3.bf16.msra.mxu0 %v3587_v22 }
 0x10d   :  { %3143 = vmatpush3.bf16.msra.mxu1 %v3589_v23  ;;  %3150 = vmatprep.subr.bf16.mxu0 %v3590_v24 }
 0x10e   :  { %3172 = vmatprep.subr.bf16.mxu1 %v3592_v25 }
 0x10f   :  { %2404 = vmatmul.mubr.bf16.vlgmr.msra.gmra.mxu0 %v3644_v30  ;;  %v1297_v6 = vpop.f32.mrf.mxu0 }
 0x110   :  { %2445 = vmatmul.mubr.bf16.vlgmr.msra.gmra.mxu1 %v3645_v31  ;;  %3151 = vmatpush3.bf16.msra.mxu0 %v3591_v26  ;;  %v1340_v7 = vpop.f32.mrf.mxu1 }
 0x111   :  { %3173 = vmatpush3.bf16.msra.mxu1 %v3593_v27  ;;  %3152 = vmatprep.subr.bf16.mxu0 %v3594_v28  ;;  %v1299_v8 = vpop.f32.mrf.mxu0  ;;  %v1341_v25 = vadd.f32 %v1340_v7, %v1297_v6 }
 0x112   :  { %3174 = vmatprep.subr.bf16.mxu1 %v3596_v29  ;;  %2485 = vmatprep.mubr.bf16.mxu0 %v3762_v19  ;;  %v3604_v19 = vld [vmem:[%s4165_s3 + $0x2e0] sm:$0xff]   ;;  %v1342_v9 = vpop.f32.mrf.mxu1 }
 0x113   :  { %2526 = vmatprep.mubr.bf16.mxu1 %v3767_v21  ;;  %v3603_v21 = vld [vmem:[%s4165_s3 + $0x220] sm:$0xff]   ;;  %v1301_v10 = vpop.f32.mrf.mxu0  ;;  %v1343_v24 = vadd.f32 %v1342_v9, %v1299_v8 }
 0x114   :  { %3153 = vmatpush3.bf16.msra.mxu0 %v3595_v32  ;;  %v1344_v13 = vpop.f32.mrf.mxu1 }
 0x115   :  { %3175 = vmatpush3.bf16.msra.mxu1 %v3597_v33  ;;  %3154 = vmatprep.subr.bf16.mxu0 %v3598_v34  ;;  %v1303_v14 = vpop.f32.mrf.mxu0  ;;  %v1345_v26 = vadd.f32 %v1344_v13, %v1301_v10 }
 0x116   :  { %3176 = vmatprep.subr.bf16.mxu1 %v3600_v35  ;;  %v1346_v15 = vpop.f32.mrf.mxu1 }
 0x117   :  { %v1347_v31 = vadd.f32 %v1346_v15, %v1303_v14 }
 0x118   :  { %3155 = vmatpush3.bf16.msra.mxu0 %v3599_v36 }
 0x119   :  { %3177 = vmatpush3.bf16.msra.mxu1 %v3601_v37  ;;  %3156 = vmatprep.subr.bf16.mxu0 %v3602_v38 }
 0x11a   :  { %3178 = vmatprep.subr.bf16.mxu1 %v3604_v19 }
 0x11c   :  { %3157 = vmatpush3.bf16.msra.mxu0 %v3603_v21 }
 0x11d   :  { %3179 = vmatpush3.bf16.msra.mxu1 %v3605_v39  ;;  %3158 = vmatprep.subr.bf16.mxu0 %v3606_v40  ;;  %v2536_v40 = vld [vmem:[%s4163_s1 + $0x8] sm:$0xff] }
 0x11e   :  { %3180 = vmatprep.subr.bf16.mxu1 %v3608_v41 }
 0x120   :  { %3159 = vmatpush3.bf16.msra.mxu0 %v3607_v42 }
 0x121   :  { %3181 = vmatpush3.bf16.msra.mxu1 %v3609_v43  ;;  %3160 = vmatprep.subr.bf16.mxu0 %v3610_v44 }
 0x122   :  { %3182 = vmatprep.subr.bf16.mxu1 %v3612_v45  ;;  %v2535_v45 = vld [vmem:[%s4163_s1] sm:$0xff] }
 0x124   :  { %3161 = vmatpush3.bf16.msra.mxu0 %v3611_v46 }
 0x125   :  { %3183 = vmatpush3.bf16.msra.mxu1 %v3613_v47  ;;  %3162 = vmatprep.subr.bf16.mxu0 %v3614_v48  ;;  %v2538_v47 = vunpack.c.h.bf16 %v2535_v45  ;;  %v2539_v48 = vunpack.c.l.bf16 %v2536_v40 }
 0x126   :  { %3184 = vmatprep.subr.bf16.mxu1 %v3616_v49 }
 0x128   :  { %3163 = vmatpush3.bf16.msra.mxu0 %v3615_v50 }
 0x129   :  { %3185 = vmatpush3.bf16.msra.mxu1 %v3617_v51  ;;  %3164 = vmatprep.subr.bf16.mxu0 %v3618_v52 }
 0x12a   :  { %3186 = vmatprep.subr.bf16.mxu1 %v3620_v53  ;;  %v2540_v53 = vunpack.c.h.bf16 %v2536_v40 }
 0x12c   :  { %3165 = vmatpush3.bf16.msra.mxu0 %v3619_v54 }
 0x12d   :  { %3187 = vmatpush3.bf16.msra.mxu1 %v3621_v55  ;;  %3194 = vmatprep.subr.bf16.mxu0 %v3622_v56  ;;  %v2537_v55 = vunpack.c.l.bf16 %v2535_v45 }
 0x12f   :  { %2486 = vmatmul.mubr.bf16.vlgmr.msra.gmra.mxu0 %v3777_v11  ;;  %v3628_v11 = vld [vmem:[%s4166_s4 + $0x60] sm:$0xff]  }
 0x130   :  { %2527 = vmatmul.mubr.bf16.vlgmr.msra.gmra.mxu1 %v3782_v12  ;;  %3195 = vmatpush3.bf16.msra.mxu0 %v3623_v57  ;;  %v3629_v12 = vld [vmem:[%s4166_s4 + $0x20] sm:$0xff]  }
 0x131   :  { %3196 = vmatprep.subr.bf16.mxu0 %v3624_v58 }
 0x134   :  { %3197 = vmatpush3.bf16.msra.mxu0 %v3625_v59 }
 0x135   :  { %3198 = vmatprep.subr.bf16.mxu0 %v3626_v60 }
 0x138   :  { %3199 = vmatpush3.bf16.msra.mxu0 %v3627_v61 }
 0x139   :  { %3200 = vmatprep.subr.bf16.mxu0 %v3628_v11 }
 0x13c   :  { %3201 = vmatpush3.bf16.msra.mxu0 %v3629_v12 }
 0x13d   :  { %3202 = vmatprep.subr.bf16.mxu0 %v3630_v62 }
 0x140   :  { %3203 = vmatpush3.bf16.msra.mxu0 %v3631_v63 }
 0x141   :  { %3204 = vmatprep.subr.bf16.mxu0 %v3632_v0 }
 0x144   :  { %3205 = vmatpush3.bf16.msra.mxu0 %v3633_v1 }
 0x145   :  { %3206 = vmatprep.subr.bf16.mxu0 %v3634_v2 }
 0x148   :  { %3207 = vmatpush3.bf16.msra.mxu0 %v3635_v3 }
 0x149   :  { %3208 = vmatprep.subr.bf16.mxu0 %v3636_v4 }
 0x14c   :  { %3209 = vmatpush3.bf16.msra.mxu0 %v3637_v5 }
 0x14f   :  { %v1383_v16 = vpop.f32.mrf.mxu0 }
 0x150   :  { %v1426_v17 = vpop.f32.mrf.mxu1  ;;  %v1384_v28 = vadd.f32 %v1383_v16, %v1341_v25 }
 0x151   :  { %v1385_v18 = vpop.f32.mrf.mxu0 }
 0x152   :  { %v1428_v20 = vpop.f32.mrf.mxu1  ;;  %v1386_v27 = vadd.f32 %v1385_v18, %v1343_v24  ;;  %v1427_v37 = vadd.f32 %v1426_v17, %v1384_v28 }
 0x153   :  { %v1387_v22 = vpop.f32.mrf.mxu0 }
 0x154   :  { %v1430_v23 = vpop.f32.mrf.mxu1  ;;  %v1388_v32 = vadd.f32 %v1387_v22, %v1345_v26  ;;  %v1429_v35 = vadd.f32 %v1428_v20, %v1386_v27 }
 0x155   :  { %v1389_v29 = vpop.f32.mrf.mxu0 }
 0x156   :  { %v1432_v30 = vpop.f32.mrf.mxu1  ;;  %v1390_v36 = vadd.f32 %v1389_v29, %v1347_v31  ;;  %v1431_v21 = vadd.f32 %v1430_v23, %v1388_v32 }
 0x158   :  { %v1433_v44 = vadd.f32 %v1432_v30, %v1390_v36 }
 0x18f   :  { %v1469_v33 = vpop.f32.mrf.mxu0 }
 0x190   :  { %v1512_v34 = vpop.f32.mrf.mxu1  ;;  %v1470_v41 = vadd.f32 %v1469_v33, %v1427_v37 }
 0x191   :  { %v1471_v38 = vpop.f32.mrf.mxu0 }
 0x192   :  { %v1514_v19 = vpop.f32.mrf.mxu1  ;;  %v1472_v39 = vadd.f32 %v1471_v38, %v1429_v35  ;;  %v1513_v54 = vadd.f32 %v1512_v34, %v1470_v41 }
 0x193   :  { %v1473_v42 = vpop.f32.mrf.mxu0 }
 0x194   :  { %v1516_v43 = vpop.f32.mrf.mxu1  ;;  %v1474_v46 = vadd.f32 %v1473_v42, %v1431_v21  ;;  %v1515_v50 = vadd.f32 %v1514_v19, %v1472_v39  ;;  %v2541_v61 = vmul.f32 %v2537_v55, %v1513_v54 }
 0x195   :  { %v1475_v49 = vpop.f32.mrf.mxu0 }
 0x196   :  { %v1517_v51 = vadd.f32 %v1516_v43, %v1474_v46  ;;  %v1476_v52 = vadd.f32 %v1475_v49, %v1433_v44  ;;  %v1518_v56 = vpop.f32.mrf.mxu1  ;;  %v2542_v59 = vmul.f32 %v2538_v47, %v1515_v50 }
 0x198   :  { %v1519_v57 = vadd.f32 %v1518_v56, %v1476_v52  ;;  %v2543_v58 = vmul.f32 %v2539_v48, %v1517_v51  ;;  %v3061_v48 = vld [vmem:[%s4167_s5] ss:$0 sm:$0xff] }
 0x19a   :  { %v2544_v60 = vmul.f32 %v2540_v53, %v1519_v57  ;;  %v2545_v12 = vpack.c.bf16 %v2543_v58, %v2541_v61 }
 0x19c   :  { %v2546_v11 = vpack.c.bf16 %v2544_v60, %v2542_v59 }
 0x19e   :  { %2707 = vmatprep.mubr.bf16.mxu0 %v2546_v11 }
 0x19f   :  { %2708 = vmatmul.mubr.bf16.vlgmr.msra.gmra.mxu0 %v2545_v12 }
 0x1af   :  { %v3078_v62 = vpop.f32.mrf.mxu0 }
 0x1b0   :  { %v3100_v0 = vpop.f32.mrf.mxu1 }
 0x1b1   :  { %v3079_v63 = vpop.f32.mrf.mxu0 }
 0x1b2   :  { %v3101_v2 = vpop.f32.mrf.mxu1  ;;  %v3080_v15 = vadd.f32 %v3079_v63, %v3078_v62 }
 0x1b3   :  { %v3081_v1 = vpop.f32.mrf.mxu0  ;;  %v3102_v16 = vadd.f32 %v3101_v2, %v3100_v0 }
 0x1b4   :  { %v3103_v4 = vpop.f32.mrf.mxu1 }
 0x1b5   :  { %v3082_v3 = vpop.f32.mrf.mxu0  ;;  %v2365_v20 = vadd.f32 %v3102_v16, %v3080_v15 }
 0x1b6   :  { %v3104_v5 = vpop.f32.mrf.mxu1  ;;  %v3083_v22 = vadd.f32 %v3082_v3, %v3081_v1 }
 0x1b7   :  { %v3105_v23 = vadd.f32 %v3104_v5, %v3103_v4 }
 0x1b9   :  { %v2368_v27 = vadd.f32 %v3105_v23, %v3083_v22 }
 0x1cf   :  { %v3122_v6 = vpop.f32.mrf.mxu0 }
 0x1d0   :  { %v3144_v8 = vpop.f32.mrf.mxu1 }
 0x1d1   :  { %v3123_v7 = vpop.f32.mrf.mxu0 }
 0x1d2   :  { %v3145_v10 = vpop.f32.mrf.mxu1  ;;  %v3124_v24 = vadd.f32 %v3123_v7, %v3122_v6 }
 0x1d3   :  { %v3125_v9 = vpop.f32.mrf.mxu0  ;;  %v3146_v29 = vadd.f32 %v3145_v10, %v3144_v8 }
 0x1d4   :  { %v3147_v14 = vpop.f32.mrf.mxu1  ;;  %v2406_v28 = vadd.f32 %v3124_v24, %v2365_v20 }
 0x1d5   :  { %v3126_v13 = vpop.f32.mrf.mxu0 }
 0x1d6   :  { %v3148_v17 = vpop.f32.mrf.mxu1  ;;  %v3127_v30 = vadd.f32 %v3126_v13, %v3125_v9  ;;  %v2447_v33 = vadd.f32 %v3146_v29, %v2406_v28 }
 0x1d7   :  { %v3149_v35 = vadd.f32 %v3148_v17, %v3147_v14 }
 0x1d8   :  { %v2409_v34 = vadd.f32 %v3127_v30, %v2368_v27 }
 0x1da   :  { %v2450_v19 = vadd.f32 %v3149_v35, %v2409_v34 }
 0x1ef   :  { %v3166_v18 = vpop.f32.mrf.mxu0 }
 0x1f0   :  { %v3188_v26 = vpop.f32.mrf.mxu1 }
 0x1f1   :  { %v3167_v25 = vpop.f32.mrf.mxu0 }
 0x1f2   :  { %v3189_v32 = vpop.f32.mrf.mxu1  ;;  %v3168_v36 = vadd.f32 %v3167_v25, %v3166_v18 }
 0x1f3   :  { %v3169_v31 = vpop.f32.mrf.mxu0  ;;  %v3190_v39 = vadd.f32 %v3189_v32, %v3188_v26 }
 0x1f4   :  { %v3191_v38 = vpop.f32.mrf.mxu1  ;;  %v2488_v21 = vadd.f32 %v3168_v36, %v2447_v33 }
 0x1f5   :  { %v3170_v37 = vpop.f32.mrf.mxu0 }
 0x1f6   :  { %v3171_v40 = vadd.f32 %v3170_v37, %v3169_v31  ;;  %v3192_v41 = vpop.f32.mrf.mxu1  ;;  %v2529_v44 = vadd.f32 %v3190_v39, %v2488_v21 }
 0x1f7   :  { %v3193_v46 = vadd.f32 %v3192_v41, %v3191_v38 }
 0x1f8   :  { %v2491_v45 = vadd.f32 %v3171_v40, %v2450_v19 }
 0x1fa   :  { %v2532_v52 = vadd.f32 %v3193_v46, %v2491_v45 }
 0x25f   :  { %v3210_v42 = vpop.f32.mrf.mxu0 }
 0x261   :  { %v3211_v43 = vpop.f32.mrf.mxu0 }
 0x262   :  { %v3212_v47 = vadd.f32 %v3211_v43, %v3210_v42 }
 0x263   :  { %v3213_v49 = vpop.f32.mrf.mxu0 }
 0x264   :  { %v2710_v50 = vadd.f32 %v3212_v47, %v2529_v44 }
 0x265   :  { %v3214_v51 = vpop.f32.mrf.mxu0 }
 0x266   :  { %v2723_v53 = vadd.f32 %v3061_v48, %v2710_v50  ;;  %v3215_v54 = vadd.f32 %v3214_v51, %v3213_v49 }
 0x268   :  { %v2713_v55 = vadd.f32 %v3215_v54, %v2532_v52  ;;  %2726 = vst.msk [vmem:[#allocation5] sm:$0xff] %vm2725_vm0, %v2723_v53 }
 0x26a   :  { %v2724_v56 = vadd.f32 %v3061_v48, %v2713_v55 }
 0x26c   :  { %2727 = vst.msk [vmem:[#allocation5 + $0x8] sm:$0xff] %vm2725_vm0, %v2724_v56 }
 0x26d   :  { %3677 = shalt.err (!%p3674_p9)
}
 0x26e   :  { %2739 = dma.vmem_to_hbm [thread:$0]  %s2734_s13, 256, %s4168_s6, [#allocation4], %s3691_s24, %s3691_s24, %s3692_s25  }
 0x26f   :  { %3688 = dma.done.wait [#allocation4], 256  }
 0x270   :  { %3689 = vsyncadd [#allocation4], 4294967040 }
 0x271   :  { %2743 = vsyncpa [#allocation3], 1 }
 0x272   :  { %2744 = vsyncpa [#allocation4], 1 }

</bundles_post_ra>
